<compile_context>
chip_gen: v5e
topology: v5e:2x2
jax: 0.10.0
libtpu: 0.0.40
codegen_flags: <defaults>
</compile_context>

<pallas_src>
import jax
import jax.numpy as jnp
from jax.experimental import pallas as pl
from jax.experimental.pallas import tpu as pltpu

NEURON = 512
INPUT_SIZE = 27
OUTPUT_SIZE = 4
OUT_PAD = 128          # lane-dense output width (multiple of 128)
BN_EPS = 1e-5


def _dnn_kernel(x_ref,
                w1_ref, b1_ref,
                w2_ref, b2_ref,
                w3_ref, b3_ref,
                w4_ref, b4_ref,
                o_ref):
    """One batch tile of the full forward pass.

    x:  (TB, 27) f32         w1: (27, 512) bf16   w2/w3: (512, 512) bf16
    w4: (512, 128) bf16 (cols 4..127 are zero)    b*: f32
    o:  (TB, 128) f32 (cols 4..127 are zero)
    Matmuls run on the MXU in bf16 with f32 accumulation; bias + ReLU on VPU.
    BatchNorm is pre-folded into w*/b*; Dropout is identity (eval mode).
    """
    h = x_ref[...].astype(jnp.bfloat16)

    h = jnp.dot(h, w1_ref[...], preferred_element_type=jnp.float32) + b1_ref[...]
    h = jnp.maximum(h, 0.0).astype(jnp.bfloat16)

    h = jnp.dot(h, w2_ref[...], preferred_element_type=jnp.float32) + b2_ref[...]
    h = jnp.maximum(h, 0.0).astype(jnp.bfloat16)

    h = jnp.dot(h, w3_ref[...], preferred_element_type=jnp.float32) + b3_ref[...]
    h = jnp.maximum(h, 0.0).astype(jnp.bfloat16)

    out = jnp.dot(h, w4_ref[...], preferred_element_type=jnp.float32) + b4_ref[...]
    # The source module has nn.ReLU() after the last Linear — keep it.
    o_ref[...] = jnp.maximum(out, 0.0).astype(o_ref.dtype)


def _pick_batch_tile(batch: int) -> int:
    """Batch tile: 256 rows (MXU-friendly) for big batches, else round up to 8."""
    if batch >= 256:
        return 256
    return max(8, -(-batch // 8) * 8)


@jax.jit
def dnn_forward(x, params):
    """x: (B, 27) float32 -> (B, 4) float32."""
    batch = x.shape[0]
    tb = _pick_batch_tile(batch)
    padded = -(-batch // tb) * tb
    if padded != batch:
        x = jnp.pad(x, ((0, padded - batch), (0, 0)))

    const = lambda i: (0, 0)          # weights/biases stay VMEM-resident
    out = pl.pallas_call(
        _dnn_kernel,
        out_shape=jax.ShapeDtypeStruct((padded, OUT_PAD), jnp.float32),
        grid_spec=pltpu.PrefetchScalarGridSpec(
            num_scalar_prefetch=0,
            grid=(padded // tb,),
            in_specs=[
                pl.BlockSpec((tb, INPUT_SIZE), lambda i: (i, 0)),
                pl.BlockSpec((INPUT_SIZE, NEURON), const),
                pl.BlockSpec((1, NEURON), const),
                pl.BlockSpec((NEURON, NEURON), const),
                pl.BlockSpec((1, NEURON), const),
                pl.BlockSpec((NEURON, NEURON), const),
                pl.BlockSpec((1, NEURON), const),
                pl.BlockSpec((NEURON, OUT_PAD), const),
                pl.BlockSpec((1, OUT_PAD), const),
            ],
            out_specs=pl.BlockSpec((tb, OUT_PAD), lambda i: (i, 0)),
        ),
        compiler_params=pltpu.CompilerParams(
            dimension_semantics=("parallel",)),
    )(x,
      params["w1"], params["b1"],
      params["w2"], params["b2"],
      params["w3"], params["b3"],
      params["w4"], params["b4"])
    return out[:batch, :OUTPUT_SIZE]


def fold_params(raw, gamma, beta, running_mean, running_var):
    """Fold eval-mode BatchNorm into the Linear weights/biases.

    Must be re-run if the live running stats change after init.
    Hidden-layer weights become bf16; the output head is zero-padded to 128
    columns so the kernel's output store is lane-dense.
    """
    params = {}
    s = gamma / jnp.sqrt(running_var + BN_EPS)
    t = beta - running_mean * s
    for i in (1, 2, 3):
        w = raw[f"w{i}"] * s[None, :]
        b = raw[f"b{i}"] * s[None, :] + t[None, :]
        params[f"w{i}"] = w.astype(jnp.bfloat16)
        params[f"b{i}"] = b.astype(jnp.float32)
    w4 = jnp.zeros((NEURON, OUT_PAD), jnp.float32).at[:, :OUTPUT_SIZE].set(raw["w4"])
    b4 = jnp.zeros((1, OUT_PAD), jnp.float32).at[:, :OUTPUT_SIZE].set(raw["b4"])
    params["w4"] = w4.astype(jnp.bfloat16)
    params["b4"] = b4
    return params


def init_params(key):
    """PyTorch-default init: W, b ~ U(-1/sqrt(fan_in), 1/sqrt(fan_in)).

    BatchNorm1d init: gamma=1, beta=0, running_mean=0, running_var=1.
    Weights are stored transposed (in_features, out_features) so the kernel
    computes x @ W directly.
    """
    dims = [(INPUT_SIZE, NEURON), (NEURON, NEURON), (NEURON, NEURON),
            (NEURON, OUTPUT_SIZE)]
    raw = {}
    keys = jax.random.split(key, 2 * len(dims))
    for i, (fan_in, fan_out) in enumerate(dims):
        bound = 1.0 / jnp.sqrt(jnp.float32(fan_in))
        raw[f"w{i + 1}"] = jax.random.uniform(
            keys[2 * i], (fan_in, fan_out),
            minval=-bound, maxval=bound, dtype=jnp.float32)
        raw[f"b{i + 1}"] = jax.random.uniform(
            keys[2 * i + 1], (1, fan_out),
            minval=-bound, maxval=bound, dtype=jnp.float32)
    gamma = jnp.ones((NEURON,), jnp.float32)
    beta = jnp.zeros((NEURON,), jnp.float32)
    running_mean = jnp.zeros((NEURON,), jnp.float32)
    running_var = jnp.ones((NEURON,), jnp.float32)
    return fold_params(raw, gamma, beta, running_mean, running_var)


def dnn_reference(x, params):
    """Pure-JAX reference mirroring the kernel math (bf16 matmuls, f32 accum)."""
    h = x
    for i in (1, 2, 3):
        h = jnp.dot(h.astype(jnp.bfloat16), params[f"w{i}"],
                    preferred_element_type=jnp.float32) + params[f"b{i}"]
        h = jnp.maximum(h, 0.0)
    out = jnp.dot(h.astype(jnp.bfloat16), params["w4"],
                  preferred_element_type=jnp.float32) + params["b4"]
    return jnp.maximum(out, 0.0)[:, :OUTPUT_SIZE]


if __name__ == "__main__":
    key = jax.random.PRNGKey(0)
    pkey, xkey = jax.random.split(key)
    params = init_params(pkey)

    batch = 8
    x = jax.random.normal(xkey, (batch, INPUT_SIZE), dtype=jnp.float32)

    out = jax.block_until_ready(dnn_forward(x, params))
    ref = dnn_reference(x, params)

    assert out.shape == (batch, OUTPUT_SIZE), out.shape
    assert jnp.allclose(out, ref, atol=1e-2, rtol=1e-2), (
        f"max abs err = {jnp.max(jnp.abs(out - ref))}")

    print("KERNEL_OK")
</pallas_src>

<mosaic_0001>
module attributes {stable_mosaic.version = 11 : i64} {
  func.func @_dnn_kernel(%arg0: i32, %arg1: memref<8x27xf32, #tpu.memory_space<vmem>>, %arg2: memref<27x512xbf16, #tpu.memory_space<vmem>>, %arg3: memref<1x512xf32, #tpu.memory_space<vmem>>, %arg4: memref<512x512xbf16, #tpu.memory_space<vmem>>, %arg5: memref<1x512xf32, #tpu.memory_space<vmem>>, %arg6: memref<512x512xbf16, #tpu.memory_space<vmem>>, %arg7: memref<1x512xf32, #tpu.memory_space<vmem>>, %arg8: memref<512x128xbf16, #tpu.memory_space<vmem>>, %arg9: memref<1x128xf32, #tpu.memory_space<vmem>>, %arg10: memref<8x128xf32, #tpu.memory_space<vmem>>) attributes {dimension_semantics = [#tpu.dimension_semantics<parallel>], iteration_bounds = array<i64: 1>, scalar_prefetch = 0 : i64, scratch_operands = 0 : i64, tpu.core_type = #tpu.core_type<tc>, window_params = [{transform_indices = @transform_0, window_bounds = array<i64: 8, 27>}, {pipeline_mode = #tpu.pipeline_mode<synchronous>, transform_indices = @transform_1, window_bounds = array<i64: 27, 512>}, {pipeline_mode = #tpu.pipeline_mode<synchronous>, transform_indices = @transform_2, window_bounds = array<i64: 1, 512>}, {pipeline_mode = #tpu.pipeline_mode<synchronous>, transform_indices = @transform_3, window_bounds = array<i64: 512, 512>}, {pipeline_mode = #tpu.pipeline_mode<synchronous>, transform_indices = @transform_4, window_bounds = array<i64: 1, 512>}, {pipeline_mode = #tpu.pipeline_mode<synchronous>, transform_indices = @transform_5, window_bounds = array<i64: 512, 512>}, {pipeline_mode = #tpu.pipeline_mode<synchronous>, transform_indices = @transform_6, window_bounds = array<i64: 1, 512>}, {pipeline_mode = #tpu.pipeline_mode<synchronous>, transform_indices = @transform_7, window_bounds = array<i64: 512, 128>}, {pipeline_mode = #tpu.pipeline_mode<synchronous>, transform_indices = @transform_8, window_bounds = array<i64: 1, 128>}, {transform_indices = @transform_9, window_bounds = array<i64: 8, 128>}]} {
    %c0 = arith.constant 0 : index
    %c0_0 = arith.constant 0 : index
    %0 = vector.load %arg1[%c0, %c0_0] : memref<8x27xf32, #tpu.memory_space<vmem>>, vector<8x27xf32>
    %1 = arith.truncf %0 : vector<8x27xf32> to vector<8x27xbf16>
    %c0_1 = arith.constant 0 : index
    %c0_2 = arith.constant 0 : index
    %2 = vector.load %arg2[%c0_1, %c0_2] : memref<27x512xbf16, #tpu.memory_space<vmem>>, vector<27x512xbf16>
    %cst = arith.constant dense<0.000000e+00> : vector<8x512xf32>
    %3 = tpu.matmul %1, %2, %cst {dimension_numbers = #tpu.dot_dimension_numbers<[1], [0], [0], [1], [0, 0, 1, 1], [], []>} : vector<8x27xbf16>, vector<27x512xbf16>, vector<8x512xf32> -> vector<8x512xf32>
    %c0_3 = arith.constant 0 : index
    %c0_4 = arith.constant 0 : index
    %4 = vector.load %arg3[%c0_3, %c0_4] : memref<1x512xf32, #tpu.memory_space<vmem>>, vector<1x512xf32>
    %5 = vector.broadcast %4 : vector<1x512xf32> to vector<8x512xf32>
    %6 = arith.addf %3, %5 : vector<8x512xf32>
    %cst_5 = arith.constant 0.000000e+00 : f32
    %7 = vector.broadcast %cst_5 : f32 to vector<8x512xf32>
    %8 = arith.maximumf %6, %7 : vector<8x512xf32>
    %9 = arith.truncf %8 : vector<8x512xf32> to vector<8x512xbf16>
    %c0_6 = arith.constant 0 : index
    %c0_7 = arith.constant 0 : index
    %10 = vector.load %arg4[%c0_6, %c0_7] : memref<512x512xbf16, #tpu.memory_space<vmem>>, vector<512x512xbf16>
    %cst_8 = arith.constant dense<0.000000e+00> : vector<8x512xf32>
    %11 = tpu.matmul %9, %10, %cst_8 {dimension_numbers = #tpu.dot_dimension_numbers<[1], [0], [0], [1], [0, 0, 1, 1], [], []>} : vector<8x512xbf16>, vector<512x512xbf16>, vector<8x512xf32> -> vector<8x512xf32>
    %c0_9 = arith.constant 0 : index
    %c0_10 = arith.constant 0 : index
    %12 = vector.load %arg5[%c0_9, %c0_10] : memref<1x512xf32, #tpu.memory_space<vmem>>, vector<1x512xf32>
    %13 = vector.broadcast %12 : vector<1x512xf32> to vector<8x512xf32>
    %14 = arith.addf %11, %13 : vector<8x512xf32>
    %cst_11 = arith.constant 0.000000e+00 : f32
    %15 = vector.broadcast %cst_11 : f32 to vector<8x512xf32>
    %16 = arith.maximumf %14, %15 : vector<8x512xf32>
    %17 = arith.truncf %16 : vector<8x512xf32> to vector<8x512xbf16>
    %c0_12 = arith.constant 0 : index
    %c0_13 = arith.constant 0 : index
    %18 = vector.load %arg6[%c0_12, %c0_13] : memref<512x512xbf16, #tpu.memory_space<vmem>>, vector<512x512xbf16>
    %cst_14 = arith.constant dense<0.000000e+00> : vector<8x512xf32>
    %19 = tpu.matmul %17, %18, %cst_14 {dimension_numbers = #tpu.dot_dimension_numbers<[1], [0], [0], [1], [0, 0, 1, 1], [], []>} : vector<8x512xbf16>, vector<512x512xbf16>, vector<8x512xf32> -> vector<8x512xf32>
    %c0_15 = arith.constant 0 : index
    %c0_16 = arith.constant 0 : index
    %20 = vector.load %arg7[%c0_15, %c0_16] : memref<1x512xf32, #tpu.memory_space<vmem>>, vector<1x512xf32>
    %21 = vector.broadcast %20 : vector<1x512xf32> to vector<8x512xf32>
    %22 = arith.addf %19, %21 : vector<8x512xf32>
    %cst_17 = arith.constant 0.000000e+00 : f32
    %23 = vector.broadcast %cst_17 : f32 to vector<8x512xf32>
    %24 = arith.maximumf %22, %23 : vector<8x512xf32>
    %25 = arith.truncf %24 : vector<8x512xf32> to vector<8x512xbf16>
    %c0_18 = arith.constant 0 : index
    %c0_19 = arith.constant 0 : index
    %26 = vector.load %arg8[%c0_18, %c0_19] : memref<512x128xbf16, #tpu.memory_space<vmem>>, vector<512x128xbf16>
    %cst_20 = arith.constant dense<0.000000e+00> : vector<8x128xf32>
    %27 = tpu.matmul %25, %26, %cst_20 {dimension_numbers = #tpu.dot_dimension_numbers<[1], [0], [0], [1], [0, 0, 1, 1], [], []>} : vector<8x512xbf16>, vector<512x128xbf16>, vector<8x128xf32> -> vector<8x128xf32>
    %c0_21 = arith.constant 0 : index
    %c0_22 = arith.constant 0 : index
    %28 = vector.load %arg9[%c0_21, %c0_22] : memref<1x128xf32, #tpu.memory_space<vmem>>, vector<1x128xf32>
    %29 = vector.broadcast %28 : vector<1x128xf32> to vector<8x128xf32>
    %30 = arith.addf %27, %29 : vector<8x128xf32>
    %cst_23 = arith.constant 0.000000e+00 : f32
    %31 = vector.broadcast %cst_23 : f32 to vector<8x128xf32>
    %32 = arith.maximumf %30, %31 : vector<8x128xf32>
    %c0_24 = arith.constant 0 : index
    %c0_25 = arith.constant 0 : index
    %33 = vector.load %arg10[%c0_24, %c0_25] : memref<8x128xf32, #tpu.memory_space<vmem>>, vector<8x128xf32>
    tpu.vector_store %arg10[%c0_24, %c0_25], %32 {strides = array<i32>} : memref<8x128xf32, #tpu.memory_space<vmem>>, vector<8x128xf32>,
    return
  }
  func.func @transform_0(%arg0: i32) -> (i32, i32) {
    %c0_i32 = arith.constant 0 : i32
    %c0_i32_0 = arith.constant 0 : i32
    return %arg0, %c0_i32 : i32, i32
  }
  func.func @transform_1(%arg0: i32) -> (i32, i32) {
    %c0_i32 = arith.constant 0 : i32
    %c0_i32_0 = arith.constant 0 : i32
    %c0_i32_1 = arith.constant 0 : i32
    return %c0_i32, %c0_i32_0 : i32, i32
  }
  func.func @transform_2(%arg0: i32) -> (i32, i32) {
    %c0_i32 = arith.constant 0 : i32
    %c0_i32_0 = arith.constant 0 : i32
    %c0_i32_1 = arith.constant 0 : i32
    return %c0_i32, %c0_i32_0 : i32, i32
  }
  func.func @transform_3(%arg0: i32) -> (i32, i32) {
    %c0_i32 = arith.constant 0 : i32
    %c0_i32_0 = arith.constant 0 : i32
    %c0_i32_1 = arith.constant 0 : i32
    return %c0_i32, %c0_i32_0 : i32, i32
  }
  func.func @transform_4(%arg0: i32) -> (i32, i32) {
    %c0_i32 = arith.constant 0 : i32
    %c0_i32_0 = arith.constant 0 : i32
    %c0_i32_1 = arith.constant 0 : i32
    return %c0_i32, %c0_i32_0 : i32, i32
  }
  func.func @transform_5(%arg0: i32) -> (i32, i32) {
    %c0_i32 = arith.constant 0 : i32
    %c0_i32_0 = arith.constant 0 : i32
    %c0_i32_1 = arith.constant 0 : i32
    return %c0_i32, %c0_i32_0 : i32, i32
  }
  func.func @transform_6(%arg0: i32) -> (i32, i32) {
    %c0_i32 = arith.constant 0 : i32
    %c0_i32_0 = arith.constant 0 : i32
    %c0_i32_1 = arith.constant 0 : i32
    return %c0_i32, %c0_i32_0 : i32, i32
  }
  func.func @transform_7(%arg0: i32) -> (i32, i32) {
    %c0_i32 = arith.constant 0 : i32
    %c0_i32_0 = arith.constant 0 : i32
    %c0_i32_1 = arith.constant 0 : i32
    return %c0_i32, %c0_i32_0 : i32, i32
  }
  func.func @transform_8(%arg0: i32) -> (i32, i32) {
    %c0_i32 = arith.constant 0 : i32
    %c0_i32_0 = arith.constant 0 : i32
    %c0_i32_1 = arith.constant 0 : i32
    return %c0_i32, %c0_i32_0 : i32, i32
  }
  func.func @transform_9(%arg0: i32) -> (i32, i32) {
    %c0_i32 = arith.constant 0 : i32
    %c0_i32_0 = arith.constant 0 : i32
    return %arg0, %c0_i32 : i32, i32
  }
}

</mosaic_0001>

<bundles_post_ra>
// kernel: dnn_forward.1
= control target key start
LH: loop header
LB: loop body
LE: loop exit
PB: predicated region body
PF: predicated region fallthrough
CT: control target
= control target key end

     0   :  { %14 = vsyncpa [#allocation3], 0  ;;  %s4466_s0 = inlined_call_operand.hbm [shape: f32[8,27], index: 0, kind: input, shape index: {}]   ;;  %s4467_s1 = inlined_call_operand.hbm [shape: bf16[27,512], index: 1, kind: input, shape index: {}]   ;;  %s4468_s2 = inlined_call_operand.hbm [shape: f32[1,512], index: 2, kind: input, shape index: {}]   ;;  %s4469_s3 = inlined_call_operand.hbm [shape: bf16[512,512], index: 3, kind: input, shape index: {}]   ;;  %s4470_s4 = inlined_call_operand.hbm [shape: f32[1,512], index: 4, kind: input, shape index: {}]   ;;  %s4471_s5 = inlined_call_operand.hbm [shape: bf16[512,512], index: 5, kind: input, shape index: {}]   ;;  %s4472_s6 = inlined_call_operand.hbm [shape: f32[1,512], index: 6, kind: input, shape index: {}]   ;;  %s4473_s7 = inlined_call_operand.hbm [shape: bf16[512,128], index: 7, kind: input, shape index: {}]   ;;  %s4474_s8 = inlined_call_operand.vmem [shape: f32[1,128], index: 8, kind: input, shape index: {}]   ;;  %s4475_s9 = inlined_call_operand.vmem [shape: f32[8,128], index: 9, kind: output, shape index: {}]  }
   0x1   :  { %15 = vsyncpa [#allocation5], 0 }
   0x2   :  { %16 = vsyncpa [#allocation8], 0 }
   0x3   :  { %17 = vsyncpa [#allocation11], 0  ;;  %s34_s11 = sshll.u32 %s4467_s1, 4  ;;  %s35_s11 = int_to_ptr.hbm [resolvable:$true] %s34_s11 }
   0x4   :  { %18 = vsyncpa [#allocation14], 0  ;;  %s4297_s12 = smov [#allocation4]   ;;  %s58_s16 = sshll.u32 %s4469_s3, 4  ;;  %s59_s16 = int_to_ptr.hbm [resolvable:$true] %s58_s16 }
   0x5   :  { %s36_s13 = sshll.u32 %s4297_s12, 4  ;;  %s4298_s17 = smov 256   ;;  %s37_s13 = int_to_ptr.vmem [resolvable:$true] %s36_s13 }
   0x6   :  { %s4299_s18 = smov 16   ;;  %s4300_s19 = smov [#allocation7]  }
   0x7   :  { %42 = dma.hbm_to_vmem [thread:$0]  %s35_s11, 1024, %s37_s13, [#allocation5], %s4298_s17, %s4298_s17, %s4299_s18  }
   0x8   :  { %s60_s20 = sshll.u32 %s4300_s19, 4  ;;  %s82_s23 = sshll.u32 %s4471_s5, 4  ;;  %s61_s20 = int_to_ptr.vmem [resolvable:$true] %s60_s20  ;;  %s83_s23 = int_to_ptr.hbm [resolvable:$true] %s82_s23 }
   0x9   :  { %66 = dma.hbm_to_vmem [thread:$0]  %s59_s16, 16384, %s61_s20, [#allocation8], %s4298_s17, %s4298_s17, %s4299_s18  }
   0xa   :  { %s24_s25 = sshll.u32 %s4466_s0, 4  ;;  %s4301_s26 = smov [#allocation10]   ;;  %s25_s25 = int_to_ptr.hbm [resolvable:$true] %s24_s25 }
   0xb   :  { %s84_s27 = sshll.u32 %s4301_s26, 4  ;;  %s4302_s3 = smov [#allocation2]   ;;  %s85_s27 = int_to_ptr.vmem [resolvable:$true] %s84_s27 }
   0xc   :  { %90 = dma.hbm_to_vmem [thread:$0]  %s83_s23, 16384, %s85_s27, [#allocation11], %s4298_s17, %s4298_s17, %s4299_s18  }
   0xd   :  { %s26_s28 = sshll.u32 %s4302_s3, 4  ;;  %s48_s10 = sshll.u32 %s4468_s2, 4  ;;  %s27_s28 = int_to_ptr.vmem [resolvable:$true] %s26_s28  ;;  %s49_s10 = int_to_ptr.hbm [resolvable:$true] %s48_s10 }
   0xe   :  { %29 = dma.hbm_to_vmem [thread:$0]  %s25_s25, 128, %s27_s28, [#allocation3]  }
   0xf   :  { %s72_s12 = sshll.u32 %s4470_s4, 4  ;;  %s4303_s13 = smov [#allocation6]   ;;  %s73_s12 = int_to_ptr.hbm [resolvable:$true] %s72_s12 }
  0x10   :  { %s50_s0 = sshll.u32 %s4303_s13, 4  ;;  %s4304_s14 = smov [#allocation9]   ;;  %s51_s0 = int_to_ptr.vmem [resolvable:$true] %s50_s0 }
  0x11   :  { %53 = dma.hbm_to_vmem [thread:$0]  %s49_s10, 64, %s51_s0, [#allocation5]  }
  0x12   :  { %s74_s15 = sshll.u32 %s4304_s14, 4  ;;  %s96_s18 = sshll.u32 %s4472_s6, 4  ;;  %s75_s15 = int_to_ptr.vmem [resolvable:$true] %s74_s15  ;;  %s97_s18 = int_to_ptr.hbm [resolvable:$true] %s96_s18 }
  0x13   :  { %77 = dma.hbm_to_vmem [thread:$0]  %s73_s12, 64, %s75_s15, [#allocation8]  }
  0x14   :  { %s106_s20 = sshll.u32 %s4473_s7, 4  ;;  %s4305_s21 = smov [#allocation12]   ;;  %s107_s20 = int_to_ptr.hbm [resolvable:$true] %s106_s20 }
  0x15   :  { %s98_s4 = sshll.u32 %s4305_s21, 4  ;;  %s4306_s22 = smov [#allocation13]   ;;  %s99_s4 = int_to_ptr.vmem [resolvable:$true] %s98_s4 }
  0x16   :  { %101 = dma.hbm_to_vmem [thread:$0]  %s97_s18, 64, %s99_s4, [#allocation11]  }
  0x17   :  { %s108_s23 = sshll.u32 %s4306_s22, 4  ;;  %s4307_s1 = smov 64   ;;  %s109_s23 = int_to_ptr.vmem [resolvable:$true] %s108_s23 }
  0x18   :  { %s4308_s24 = smov 4  }
  0x19   :  { %114 = dma.hbm_to_vmem [thread:$0]  %s107_s20, 4096, %s109_s23, [#allocation14], %s4307_s1, %s4307_s1, %s4308_s24  }
  0x1a   :  { %4287 = dma.done.wait [#allocation3], 128  }
  0x1b   :  { %4288 = vsyncadd [#allocation3], 4294967168 }
  0x1c   :  { %4289 = dma.done.wait [#allocation5], 1088  }
  0x1d   :  { %4290 = vsyncadd [#allocation5], 4294966208 }
  0x1e   :  { %4291 = dma.done.wait [#allocation8], 16448  }
  0x1f   :  { %4292 = vsyncadd [#allocation8], 4294950848 }
  0x20   :  { %4293 = dma.done.wait [#allocation11], 16448  }
  0x21   :  { %4294 = vsyncadd [#allocation11], 4294950848 }
  0x22   :  { %4295 = dma.done.wait [#allocation14], 4096  }
  0x23   :  { %4296 = vsyncadd [#allocation14], 4294963200  ;;  %vm210_vm0 = vcmask 1044480   ;;  %vm211_vm1 = vcmask 1045504   ;;  %v4309_v0 = vmov 65535   ;;  %v150_v28 = vld [vmem:[#allocation2] sm:$0xff] }
  0x24   :  { %v212_v1 = vsel %vm210_vm0, 4294967295, %v4309_v0  ;;  %v2615_v3 = vld [vmem:[#allocation4 + $0x20] sm:$0xf]  ;;  %v3791_v4 = vld [vmem:[#allocation4 + $0x2c] sm:$0x30]  ;;  %vm206_vm2 = vcmask 220160   ;;  %v151_v39 = vpack.c.bf16 %v150_v28, %v150_v28 }
  0x25   :  { %v213_v2 = vsel %vm211_vm1, %v212_v1, 0  ;;  %v3789_v5 = vld [vmem:[#allocation4 + $0x24] sm:$0xf]  ;;  %v2616_v6 = vor.u32 %v3791_v4, %v2615_v3  ;;  %v2617_v7 = vld [vmem:[#allocation4 + $0x30] sm:$0x30] }
  0x26   :  { %v2623_v8 = vld [vmem:[#allocation4 + $0x28] sm:$0xf]  ;;  %v3792_v9 = vld [vmem:[#allocation4 + $0x34] sm:$0x30]  ;;  %v2620_v10 = vor.u32 %v3789_v5, %v2617_v7  ;;  %v3790_v12 = vld [vmem:[#allocation4 + $0x2c] sm:$0xf] }
  0x27   :  { %v2624_v11 = vor.u32 %v3792_v9, %v2623_v8  ;;  %v2625_v13 = vld [vmem:[#allocation4 + $0x38] sm:$0x30]  ;;  %v2599_v14 = vld [vmem:[#allocation4] sm:$0xf]  ;;  %v215_v15 = vand.u32 %v2616_v6, %v213_v2  ;;  %v3787_v17 = vld [vmem:[#allocation4 + $0xc] sm:$0xf0] }
  0x28   :  { %v2628_v16 = vor.u32 %v3790_v12, %v2625_v13  ;;  %v3785_v18 = vld [vmem:[#allocation4 + $0x4] sm:$0xf]  ;;  %v2601_v19 = vld [vmem:[#allocation4 + $0x10] sm:$0xf0]  ;;  %v218_v20 = vand.u32 %v2620_v10, %v213_v2  ;;  %v2607_v22 = vld [vmem:[#allocation4 + $0x8] sm:$0xf]  ;;  %v2600_v26 = vor.u32 %v3787_v17, %v2599_v14 }
  0x29   :  { %v221_v21 = vand.u32 %v2624_v11, %v213_v2  ;;  %v3788_v23 = vld [vmem:[#allocation4 + $0x14] sm:$0xf0]  ;;  %v3786_v24 = vld [vmem:[#allocation4 + $0xc] sm:$0xf]  ;;  %232 = vmatpush.bf16.msra.mxu0 %v215_v15  ;;  %v2609_v27 = vld [vmem:[#allocation4 + $0x18] sm:$0xf0]  ;;  %v2604_v30 = vor.u32 %v3785_v18, %v2601_v19 }
  0x2a   :  { %v224_v25 = vand.u32 %v2628_v16, %v213_v2  ;;  %v2747_v29 = vld [vmem:[#allocation7 + $0xe0] sm:$0xf]  ;;  %245 = vmatpush.bf16.msra.mxu1 %v218_v20  ;;  %v2608_v31 = vor.u32 %v3788_v23, %v2607_v22  ;;  %v3823_v32 = vld [vmem:[#allocation7 + $0xec] sm:$0xf0]  ;;  %v2612_v35 = vor.u32 %v3786_v24, %v2609_v27 }
  0x2b   :  { %258 = vmatpush.bf16.msra.mxu2 %v221_v21  ;;  %v2875_v33 = vld [vmem:[#allocation7 + $0x1e0] sm:$0xf]  ;;  %v3855_v34 = vld [vmem:[#allocation7 + $0x1ec] sm:$0xf0]  ;;  %v2748_v36 = vor.u32 %v3823_v32, %v2747_v29 }
  0x2c   :  { %271 = vmatpush.bf16.msra.mxu3 %v224_v25  ;;  %v2731_v37 = vld [vmem:[#allocation7 + $0xc0] sm:$0xf]  ;;  %v3819_v38 = vld [vmem:[#allocation7 + $0xcc] sm:$0xf0]  ;;  %v2876_v40 = vor.u32 %v3855_v34, %v2875_v33 }
  0x2d   :  { %v2859_v41 = vld [vmem:[#allocation7 + $0x1c0] sm:$0xf]  ;;  %v3887_v43 = vld [vmem:[#allocation7 + $0x2ec] sm:$0xf0]  ;;  %233 = vmatpush.bf16.msra.mxu0 %v2600_v26  ;;  %v2732_v48 = vor.u32 %v3819_v38, %v2731_v37 }
  0x2e   :  { %v3003_v42 = vld [vmem:[#allocation7 + $0x2e0] sm:$0xf]  ;;  %v3851_v44 = vld [vmem:[#allocation7 + $0x1cc] sm:$0xf0]  ;;  %246 = vmatpush.bf16.msra.mxu1 %v2604_v30 }
  0x2f   :  { %v3131_v45 = vld [vmem:[#allocation7 + $0x3e0] sm:$0xf]  ;;  %v3919_v46 = vld [vmem:[#allocation7 + $0x3ec] sm:$0xf0]  ;;  %259 = vmatpush.bf16.msra.mxu2 %v2608_v31  ;;  %v3004_v47 = vor.u32 %v3887_v43, %v3003_v42  ;;  %v2860_v53 = vor.u32 %v3851_v44, %v2859_v41 }
  0x30   :  { %272 = vmatpush.bf16.msra.mxu3 %v2612_v35  ;;  %v3132_v49 = vor.u32 %v3919_v46, %v3131_v45  ;;  %v2715_v50 = vld [vmem:[#allocation7 + $0xa0] sm:$0xf]  ;;  %v3883_v52 = vld [vmem:[#allocation7 + $0x2cc] sm:$0xf0]  ;;  %2629 = vmatmul.msk.bf16.vlgmr.msra.gmra.mxu0 %vm206_vm2, %v151_v39 }
  0x31   :  { %1064 = vmatpush.bf16.msrb.mxu0 %v2748_v36  ;;  %v2987_v51 = vld [vmem:[#allocation7 + $0x2c0] sm:$0xf]  ;;  %v3815_v54 = vld [vmem:[#allocation7 + $0xac] sm:$0xf0]  ;;  %2630 = vmatmul.msk.bf16.vlgmr.msra.gmra.mxu1 %vm206_vm2, %v151_v39 }
  0x32   :  { %1077 = vmatpush.bf16.msrb.mxu1 %v2876_v40  ;;  %v3115_v55 = vld [vmem:[#allocation7 + $0x3c0] sm:$0xf]  ;;  %v3915_v56 = vld [vmem:[#allocation7 + $0x3cc] sm:$0xf0]  ;;  %2631 = vmatmul.msk.bf16.vlgmr.msra.gmra.mxu2 %vm206_vm2, %v151_v39  ;;  %v2988_v59 = vor.u32 %v3883_v52, %v2987_v51  ;;  %v2716_v60 = vor.u32 %v3815_v54, %v2715_v50 }
  0x33   :  { %v2843_v57 = vld [vmem:[#allocation7 + $0x1a0] sm:$0xf]  ;;  %v3847_v58 = vld [vmem:[#allocation7 + $0x1ac] sm:$0xf0]  ;;  %2632 = vmatmul.msk.bf16.vlgmr.msra.gmra.mxu3 %vm206_vm2, %v151_v39  ;;  %1090 = vmatpush.bf16.msrb.mxu2 %v3004_v47  ;;  %v3116_v61 = vor.u32 %v3915_v56, %v3115_v55  ;;  %v3821_v55 = vld [vmem:[#allocation7 + $0xe4] sm:$0xf] }
  0x34   :  { %1103 = vmatpush.bf16.msrb.mxu3 %v3132_v49  ;;  %v2699_v62 = vld [vmem:[#allocation7 + $0x80] sm:$0xf]  ;;  %v3879_v0 = vld [vmem:[#allocation7 + $0x2ac] sm:$0xf0]  ;;  %v2844_v1 = vor.u32 %v3847_v58, %v2843_v57  ;;  %v2749_v56 = vld [vmem:[#allocation7 + $0xf0] sm:$0xf0] }
  0x35   :  { %1065 = vmatpush.bf16.msrb.mxu0 %v2732_v48  ;;  %v2971_v63 = vld [vmem:[#allocation7 + $0x2a0] sm:$0xf]  ;;  %v3811_v2 = vld [vmem:[#allocation7 + $0x8c] sm:$0xf0]  ;;  %v3853_v57 = vld [vmem:[#allocation7 + $0x1e4] sm:$0xf] }
  0x36   :  { %1078 = vmatpush.bf16.msrb.mxu1 %v2860_v53  ;;  %v3099_v3 = vld [vmem:[#allocation7 + $0x3a0] sm:$0xf]  ;;  %v3911_v4 = vld [vmem:[#allocation7 + $0x3ac] sm:$0xf0]  ;;  %v2972_v7 = vor.u32 %v3879_v0, %v2971_v63  ;;  %v2700_v8 = vor.u32 %v3811_v2, %v2699_v62  ;;  %v2877_v58 = vld [vmem:[#allocation7 + $0x1f0] sm:$0xf0] }
  0x37   :  { %v2827_v5 = vld [vmem:[#allocation7 + $0x180] sm:$0xf]  ;;  %v3843_v6 = vld [vmem:[#allocation7 + $0x18c] sm:$0xf0]  ;;  %1091 = vmatpush.bf16.msrb.mxu2 %v2988_v59  ;;  %v3100_v9 = vor.u32 %v3911_v4, %v3099_v3  ;;  %v3817_v62 = vld [vmem:[#allocation7 + $0xc4] sm:$0xf]  ;;  %v2752_v3 = vor.u32 %v3821_v55, %v2749_v56 }
  0x38   :  { %1104 = vmatpush.bf16.msrb.mxu3 %v3116_v61  ;;  %v2683_v10 = vld [vmem:[#allocation7 + $0x60] sm:$0xf]  ;;  %v3875_v12 = vld [vmem:[#allocation7 + $0x28c] sm:$0xf0]  ;;  %v2828_v13 = vor.u32 %v3843_v6, %v2827_v5  ;;  %v3885_v5 = vld [vmem:[#allocation7 + $0x2e4] sm:$0xf] }
  0x39   :  { %1066 = vmatpush.bf16.msrb.mxu0 %v2716_v60  ;;  %v2955_v11 = vld [vmem:[#allocation7 + $0x280] sm:$0xf]  ;;  %v3807_v14 = vld [vmem:[#allocation7 + $0x6c] sm:$0xf0]  ;;  %v3005_v6 = vld [vmem:[#allocation7 + $0x2f0] sm:$0xf0] }
  0x3a   :  { %1079 = vmatpush.bf16.msrb.mxu1 %v2844_v1  ;;  %v3083_v15 = vld [vmem:[#allocation7 + $0x380] sm:$0xf]  ;;  %v3907_v16 = vld [vmem:[#allocation7 + $0x38c] sm:$0xf0]  ;;  %v2956_v19 = vor.u32 %v3875_v12, %v2955_v11  ;;  %v2684_v20 = vor.u32 %v3807_v14, %v2683_v10  ;;  %v3133_v10 = vld [vmem:[#allocation7 + $0x3f0] sm:$0xf0] }
  0x3b   :  { %v2811_v17 = vld [vmem:[#allocation7 + $0x160] sm:$0xf]  ;;  %v3839_v18 = vld [vmem:[#allocation7 + $0x16c] sm:$0xf0]  ;;  %1092 = vmatpush.bf16.msrb.mxu2 %v2972_v7  ;;  %v3084_v21 = vor.u32 %v3907_v16, %v3083_v15  ;;  %v2880_v7 = vor.u32 %v3853_v57, %v2877_v58  ;;  %v3849_v11 = vld [vmem:[#allocation7 + $0x1c4] sm:$0xf]  ;;  %v3008_v15 = vor.u32 %v3885_v5, %v3005_v6 }
  0x3c   :  { %1105 = vmatpush.bf16.msrb.mxu3 %v3100_v9  ;;  %v2667_v22 = vld [vmem:[#allocation7 + $0x40] sm:$0xf]  ;;  %v3871_v24 = vld [vmem:[#allocation7 + $0x26c] sm:$0xf0]  ;;  %v2812_v25 = vor.u32 %v3839_v18, %v2811_v17  ;;  %v3917_v9 = vld [vmem:[#allocation7 + $0x3e4] sm:$0xf] }
  0x3d   :  { %1067 = vmatpush.bf16.msrb.mxu0 %v2700_v8  ;;  %v2939_v23 = vld [vmem:[#allocation7 + $0x260] sm:$0xf]  ;;  %v3803_v26 = vld [vmem:[#allocation7 + $0x4c] sm:$0xf0]  ;;  %v2733_v8 = vld [vmem:[#allocation7 + $0xd0] sm:$0xf0]  ;;  %v3136_v18 = vor.u32 %v3917_v9, %v3133_v10 }
  0x3e   :  { %1080 = vmatpush.bf16.msrb.mxu1 %v2828_v13  ;;  %v3067_v27 = vld [vmem:[#allocation7 + $0x360] sm:$0xf]  ;;  %v3903_v28 = vld [vmem:[#allocation7 + $0x36c] sm:$0xf0]  ;;  %v2940_v31 = vor.u32 %v3871_v24, %v2939_v23  ;;  %v2668_v32 = vor.u32 %v3803_v26, %v2667_v22  ;;  %v2861_v12 = vld [vmem:[#allocation7 + $0x1d0] sm:$0xf0]  ;;  %v2736_v17 = vor.u32 %v3817_v62, %v2733_v8 }
  0x3f   :  { %v2795_v29 = vld [vmem:[#allocation7 + $0x140] sm:$0xf]  ;;  %v3835_v30 = vld [vmem:[#allocation7 + $0x14c] sm:$0xf0]  ;;  %1093 = vmatpush.bf16.msrb.mxu2 %v2956_v19  ;;  %v3068_v33 = vor.u32 %v3903_v28, %v3067_v27  ;;  %v3813_v16 = vld [vmem:[#allocation7 + $0xa4] sm:$0xf] }
  0x40   :  { %1106 = vmatpush.bf16.msrb.mxu3 %v3084_v21  ;;  %v2651_v34 = vld [vmem:[#allocation7 + $0x20] sm:$0xf]  ;;  %v3867_v36 = vld [vmem:[#allocation7 + $0x24c] sm:$0xf0]  ;;  %v2796_v37 = vor.u32 %v3835_v30, %v2795_v29  ;;  %v3881_v19 = vld [vmem:[#allocation7 + $0x2c4] sm:$0xf]  ;;  %v2864_v21 = vor.u32 %v3849_v11, %v2861_v12 }
  0x41   :  { %1068 = vmatpush.bf16.msrb.mxu0 %v2684_v20  ;;  %v2923_v35 = vld [vmem:[#allocation7 + $0x240] sm:$0xf]  ;;  %v3799_v38 = vld [vmem:[#allocation7 + $0x2c] sm:$0xf0]  ;;  %v2989_v20 = vld [vmem:[#allocation7 + $0x2d0] sm:$0xf0] }
  0x42   :  { %1081 = vmatpush.bf16.msrb.mxu1 %v2812_v25  ;;  %v3051_v39 = vld [vmem:[#allocation7 + $0x340] sm:$0xf]  ;;  %v3899_v40 = vld [vmem:[#allocation7 + $0x34c] sm:$0xf0]  ;;  %v2924_v43 = vor.u32 %v3867_v36, %v2923_v35  ;;  %v2652_v45 = vor.u32 %v3799_v38, %v2651_v34  ;;  %v2717_v22 = vld [vmem:[#allocation7 + $0xb0] sm:$0xf0]  ;;  %v2992_v27 = vor.u32 %v3881_v19, %v2989_v20 }
  0x43   :  { %v2779_v41 = vld [vmem:[#allocation7 + $0x120] sm:$0xf]  ;;  %v3831_v42 = vld [vmem:[#allocation7 + $0x12c] sm:$0xf0]  ;;  %1094 = vmatpush.bf16.msrb.mxu2 %v2940_v31  ;;  %v3052_v46 = vor.u32 %v3899_v40, %v3051_v39  ;;  %v3913_v23 = vld [vmem:[#allocation7 + $0x3c4] sm:$0xf]  ;;  %v2720_v28 = vor.u32 %v3813_v16, %v2717_v22 }
  0x44   :  { %v2635_v44 = vld [vmem:[#allocation7] sm:$0xf]  ;;  %1107 = vmatpush.bf16.msrb.mxu3 %v3068_v33  ;;  %v3795_v47 = vld [vmem:[#allocation7 + $0xc] sm:$0xf0]  ;;  %v2780_v50 = vor.u32 %v3831_v42, %v2779_v41  ;;  %v3117_v24 = vld [vmem:[#allocation7 + $0x3d0] sm:$0xf0] }
  0x45   :  { %1069 = vmatpush.bf16.msrb.mxu0 %v2668_v32  ;;  %v2907_v48 = vld [vmem:[#allocation7 + $0x220] sm:$0xf]  ;;  %v3863_v49 = vld [vmem:[#allocation7 + $0x22c] sm:$0xf0]  ;;  %v2636_v60 = vor.u32 %v3795_v47, %v2635_v44  ;;  %v3845_v25 = vld [vmem:[#allocation7 + $0x1a4] sm:$0xf]  ;;  %v3120_v29 = vor.u32 %v3913_v23, %v3117_v24 }
  0x46   :  { %1082 = vmatpush.bf16.msrb.mxu1 %v2796_v37  ;;  %v2763_v51 = vld [vmem:[#allocation7 + $0x100] sm:$0xf]  ;;  %v3895_v53 = vld [vmem:[#allocation7 + $0x32c] sm:$0xf0]  ;;  %v2908_v59 = vor.u32 %v3863_v49, %v2907_v48  ;;  %v2845_v26 = vld [vmem:[#allocation7 + $0x1b0] sm:$0xf0] }
  0x47   :  { %v3035_v52 = vld [vmem:[#allocation7 + $0x320] sm:$0xf]  ;;  %v3827_v54 = vld [vmem:[#allocation7 + $0x10c] sm:$0xf0]  ;;  %1095 = vmatpush.bf16.msrb.mxu2 %v2924_v43  ;;  %v3809_v30 = vld [vmem:[#allocation7 + $0x84] sm:$0xf]  ;;  %v2848_v33 = vor.u32 %v3845_v25, %v2845_v26 }
  0x48   :  { %1108 = vmatpush.bf16.msrb.mxu3 %v3052_v46  ;;  %v3036_v61 = vor.u32 %v3895_v53, %v3035_v52  ;;  %v2891_v63 = vld [vmem:[#allocation7 + $0x200] sm:$0xf]  ;;  %v3859_v0 = vld [vmem:[#allocation7 + $0x20c] sm:$0xf0]  ;;  %v2764_v2 = vor.u32 %v3827_v54, %v2763_v51  ;;  %v3877_v31 = vld [vmem:[#allocation7 + $0x2a4] sm:$0xf] }
  0x49   :  { %1070 = vmatpush.bf16.msrb.mxu0 %v2652_v45  ;;  %v3019_v1 = vld [vmem:[#allocation7 + $0x300] sm:$0xf]  ;;  %v3891_v4 = vld [vmem:[#allocation7 + $0x30c] sm:$0xf0]  ;;  %v2892_v13 = vor.u32 %v3859_v0, %v2891_v63  ;;  %v2973_v32 = vld [vmem:[#allocation7 + $0x2b0] sm:$0xf0] }
  0x4a   :  { %1083 = vmatpush.bf16.msrb.mxu1 %v2780_v50  ;;  %v3020_v14 = vor.u32 %v3891_v4, %v3019_v1  ;;  %v2701_v34 = vld [vmem:[#allocation7 + $0x90] sm:$0xf0]  ;;  %v3909_v35 = vld [vmem:[#allocation7 + $0x3a4] sm:$0xf]  ;;  %v2976_v39 = vor.u32 %v3877_v31, %v2973_v32 }
  0x4b   :  { %1096 = vmatpush.bf16.msrb.mxu2 %v2908_v59  ;;  %v3101_v36 = vld [vmem:[#allocation7 + $0x3b0] sm:$0xf0]  ;;  %v3841_v37 = vld [vmem:[#allocation7 + $0x184] sm:$0xf]  ;;  %v2704_v40 = vor.u32 %v3809_v30, %v2701_v34 }
  0x4c   :  { %1109 = vmatpush.bf16.msrb.mxu3 %v3036_v61  ;;  %v2829_v38 = vld [vmem:[#allocation7 + $0x190] sm:$0xf0]  ;;  %v3104_v41 = vor.u32 %v3909_v35, %v3101_v36  ;;  %v3805_v42 = vld [vmem:[#allocation7 + $0x64] sm:$0xf] }
  0x4d   :  { %1071 = vmatpush.bf16.msrb.mxu0 %v2636_v60  ;;  %v3873_v43 = vld [vmem:[#allocation7 + $0x284] sm:$0xf]  ;;  %v2957_v44 = vld [vmem:[#allocation7 + $0x290] sm:$0xf0]  ;;  %v2832_v45 = vor.u32 %v3841_v37, %v2829_v38 }
  0x4e   :  { %1084 = vmatpush.bf16.msrb.mxu1 %v2764_v2  ;;  %v2685_v46 = vld [vmem:[#allocation7 + $0x70] sm:$0xf0]  ;;  %v3905_v47 = vld [vmem:[#allocation7 + $0x384] sm:$0xf]  ;;  %v2960_v51 = vor.u32 %v3873_v43, %v2957_v44  ;;  %v3856_v43 = vld [vmem:[#allocation7 + $0x1f4] sm:$0xf0] }
  0x4f   :  { %1097 = vmatpush.bf16.msrb.mxu2 %v2892_v13  ;;  %v3085_v48 = vld [vmem:[#allocation7 + $0x390] sm:$0xf0]  ;;  %v3837_v49 = vld [vmem:[#allocation7 + $0x164] sm:$0xf]  ;;  %v2688_v52 = vor.u32 %v3805_v42, %v2685_v46  ;;  %v2883_v42 = vld [vmem:[#allocation7 + $0x1e8] sm:$0xf] }
  0x50   :  { %1110 = vmatpush.bf16.msrb.mxu3 %v3020_v14  ;;  %v2813_v50 = vld [vmem:[#allocation7 + $0x170] sm:$0xf0]  ;;  %v3088_v53 = vor.u32 %v3905_v47, %v3085_v48  ;;  %v3801_v55 = vld [vmem:[#allocation7 + $0x44] sm:$0xf] }
  0x51   :  { %1116 = vmatpush.bf16.msra.mxu0 %v2752_v3  ;;  %v2816_v54 = vor.u32 %v3837_v49, %v2813_v50  ;;  %v2669_v56 = vld [vmem:[#allocation7 + $0x50] sm:$0xf0]  ;;  %v3833_v57 = vld [vmem:[#allocation7 + $0x144] sm:$0xf]  ;;  %v2884_v50 = vor.u32 %v3856_v43, %v2883_v42 }
  0x52   :  { %1129 = vmatpush.bf16.msra.mxu1 %v2880_v7  ;;  %v2797_v58 = vld [vmem:[#allocation7 + $0x150] sm:$0xf0]  ;;  %v2672_v59 = vor.u32 %v3801_v55, %v2669_v56  ;;  %v3869_v61 = vld [vmem:[#allocation7 + $0x264] sm:$0xf]  ;;  %v3852_v55 = vld [vmem:[#allocation7 + $0x1d4] sm:$0xf0] }
  0x53   :  { %1142 = vmatpush.bf16.msra.mxu2 %v3008_v15  ;;  %v2800_v60 = vor.u32 %v3833_v57, %v2797_v58  ;;  %v2941_v62 = vld [vmem:[#allocation7 + $0x270] sm:$0xf0]  ;;  %v3901_v63 = vld [vmem:[#allocation7 + $0x364] sm:$0xf] }
  0x54   :  { %1155 = vmatpush.bf16.msra.mxu3 %v3136_v18  ;;  %v2944_v0 = vor.u32 %v3869_v61, %v2941_v62  ;;  %v3069_v1 = vld [vmem:[#allocation7 + $0x370] sm:$0xf0]  ;;  %v3797_v3 = vld [vmem:[#allocation7 + $0x24] sm:$0xf]  ;;  %v3011_v61 = vld [vmem:[#allocation7 + $0x2e8] sm:$0xf] }
  0x55   :  { %1117 = vmatpush.bf16.msra.mxu0 %v2736_v17  ;;  %v3072_v2 = vor.u32 %v3901_v63, %v3069_v1  ;;  %v2653_v4 = vld [vmem:[#allocation7 + $0x30] sm:$0xf0]  ;;  %v3829_v6 = vld [vmem:[#allocation7 + $0x124] sm:$0xf]  ;;  %v3888_v62 = vld [vmem:[#allocation7 + $0x2f4] sm:$0xf0] }
  0x56   :  { %1130 = vmatpush.bf16.msra.mxu1 %v2864_v21  ;;  %v2656_v5 = vor.u32 %v3797_v3, %v2653_v4  ;;  %v2781_v7 = vld [vmem:[#allocation7 + $0x130] sm:$0xf0]  ;;  %v3865_v9 = vld [vmem:[#allocation7 + $0x244] sm:$0xf]  ;;  %v3139_v63 = vld [vmem:[#allocation7 + $0x3e8] sm:$0xf] }
  0x57   :  { %1143 = vmatpush.bf16.msra.mxu2 %v2992_v27  ;;  %v2784_v8 = vor.u32 %v3829_v6, %v2781_v7  ;;  %v2925_v10 = vld [vmem:[#allocation7 + $0x250] sm:$0xf0]  ;;  %v3897_v11 = vld [vmem:[#allocation7 + $0x344] sm:$0xf]  ;;  %v3920_v3 = vld [vmem:[#allocation7 + $0x3f4] sm:$0xf0] }
  0x58   :  { %1156 = vmatpush.bf16.msra.mxu3 %v3120_v29  ;;  %v2928_v12 = vor.u32 %v3865_v9, %v2925_v10  ;;  %v3053_v13 = vld [vmem:[#allocation7 + $0x350] sm:$0xf0]  ;;  %v3793_v15 = vld [vmem:[#allocation7 + $0x4] sm:$0xf]  ;;  %v2723_v4 = vld [vmem:[#allocation7 + $0xa8] sm:$0xf]  ;;  %v3012_v10 = vor.u32 %v3888_v62, %v3011_v61 }
  0x59   :  { %1118 = vmatpush.bf16.msra.mxu0 %v2720_v28  ;;  %v3056_v14 = vor.u32 %v3897_v11, %v3053_v13  ;;  %v2637_v16 = vld [vmem:[#allocation7 + $0x10] sm:$0xf0]  ;;  %v3825_v17 = vld [vmem:[#allocation7 + $0x104] sm:$0xf]  ;;  %v2851_v7 = vld [vmem:[#allocation7 + $0x1a8] sm:$0xf] }
  0x5a   :  { %1131 = vmatpush.bf16.msra.mxu1 %v2848_v33  ;;  %v2640_v18 = vor.u32 %v3793_v15, %v2637_v16  ;;  %v2765_v19 = vld [vmem:[#allocation7 + $0x110] sm:$0xf0]  ;;  %v3861_v21 = vld [vmem:[#allocation7 + $0x224] sm:$0xf]  ;;  %v160_v33 = vld [vmem:[#allocation6] sm:$0xf] }
  0x5b   :  { %1144 = vmatpush.bf16.msra.mxu2 %v2976_v39  ;;  %v2768_v20 = vor.u32 %v3825_v17, %v2765_v19  ;;  %v2909_v22 = vld [vmem:[#allocation7 + $0x230] sm:$0xf0]  ;;  %v3893_v24 = vld [vmem:[#allocation7 + $0x324] sm:$0xf]  ;;  %v162_v34 = vperm.slane %v160_v33, 0  ;;  %v163_v35 = vperm.slane %v160_v33, 1 }
  0x5c   :  { %1157 = vmatpush.bf16.msra.mxu3 %v3104_v41  ;;  %v2912_v23 = vor.u32 %v3861_v21, %v2909_v22  ;;  %v3037_v25 = vld [vmem:[#allocation7 + $0x330] sm:$0xf0]  ;;  %v3857_v27 = vld [vmem:[#allocation7 + $0x204] sm:$0xf]  ;;  %v2755_v39 = vld [vmem:[#allocation7 + $0xe8] sm:$0xf] }
  0x5d   :  { %1119 = vmatpush.bf16.msra.mxu0 %v2704_v40  ;;  %v3040_v26 = vor.u32 %v3893_v24, %v3037_v25  ;;  %v2893_v28 = vld [vmem:[#allocation7 + $0x210] sm:$0xf0]  ;;  %v3889_v30 = vld [vmem:[#allocation7 + $0x304] sm:$0xf]  ;;  %v3824_v40 = vld [vmem:[#allocation7 + $0xf4] sm:$0xf0] }
  0x5e   :  { %1132 = vmatpush.bf16.msra.mxu1 %v2832_v45  ;;  %v2896_v29 = vor.u32 %v3857_v27, %v2893_v28  ;;  %v3021_v31 = vld [vmem:[#allocation7 + $0x310] sm:$0xf0]  ;;  %v164_v46 = vperm.slane %v160_v33, 2  ;;  %v2756_v47 = vor.u32 %v3824_v40, %v2755_v39  ;;  %v165_v49 = vperm.slane %v160_v33, 3  ;;  %v3884_v15 = vld [vmem:[#allocation7 + $0x2d4] sm:$0xf0] }
  0x5f   :  { %1145 = vmatpush.bf16.msra.mxu2 %v2960_v51  ;;  %v3024_v32 = vor.u32 %v3889_v30, %v3021_v31  ;;  %v2739_v51 = vld [vmem:[#allocation7 + $0xc8] sm:$0xf]  ;;  %v3916_v19 = vld [vmem:[#allocation7 + $0x3d4] sm:$0xf0] }
  0x60   :  { %1158 = vmatpush.bf16.msra.mxu3 %v3088_v53  ;;  %v3123_v16 = vld [vmem:[#allocation7 + $0x3c8] sm:$0xf]  ;;  %v3812_v21 = vld [vmem:[#allocation7 + $0x94] sm:$0xf0] }
  0x61   :  { %1120 = vmatpush.bf16.msra.mxu0 %v2688_v52  ;;  %v3820_v52 = vld [vmem:[#allocation7 + $0xd4] sm:$0xf0]  ;;  %v2835_v22 = vld [vmem:[#allocation7 + $0x188] sm:$0xf]  ;;  %v3124_v27 = vor.u32 %v3916_v19, %v3123_v16  ;;  %v3854_v16 = vld [vmem:[#allocation7 + $0x1ec] sm:$0xf] }
  0x62   :  { %1133 = vmatpush.bf16.msra.mxu1 %v2816_v54  ;;  %v2867_v54 = vld [vmem:[#allocation7 + $0x1c8] sm:$0xf]  ;;  %v3880_v30 = vld [vmem:[#allocation7 + $0x2b4] sm:$0xf0] }
  0x63   :  { %1146 = vmatpush.bf16.msra.mxu2 %v2944_v0  ;;  %v3912_v33 = vld [vmem:[#allocation7 + $0x3b4] sm:$0xf0]  ;;  %v2963_v40 = vld [vmem:[#allocation7 + $0x288] sm:$0xf] }
  0x64   :  { %1159 = vmatpush.bf16.msra.mxu3 %v3072_v2  ;;  %v2868_v2 = vor.u32 %v3852_v55, %v2867_v54  ;;  %v2947_v54 = vld [vmem:[#allocation7 + $0x268] sm:$0xf]  ;;  %v3872_v55 = vld [vmem:[#allocation7 + $0x274] sm:$0xf0] }
  0x65   :  { %1121 = vmatpush.bf16.msra.mxu0 %v2672_v59  ;;  %v3800_v61 = vld [vmem:[#allocation7 + $0x34] sm:$0xf0]  ;;  %v2787_v62 = vld [vmem:[#allocation7 + $0x128] sm:$0xf] }
  0x66   :  { %1134 = vmatpush.bf16.msra.mxu1 %v2800_v60  ;;  %v2740_v60 = vor.u32 %v3820_v52, %v2739_v51 }
  0x67   :  { %1147 = vmatpush.bf16.msra.mxu2 %v2928_v12  ;;  %v3140_v12 = vor.u32 %v3920_v3, %v3139_v63  ;;  %v3832_v63 = vld [vmem:[#allocation7 + $0x134] sm:$0xf0] }
  0x68   :  { %1160 = vmatpush.bf16.msra.mxu3 %v3056_v14  ;;  %v2995_v14 = vld [vmem:[#allocation7 + $0x2c8] sm:$0xf]  ;;  %v3868_v3 = vld [vmem:[#allocation7 + $0x254] sm:$0xf0] }
  0x69   :  { %1122 = vmatpush.bf16.msra.mxu0 %v2656_v5  ;;  %v3816_v5 = vld [vmem:[#allocation7 + $0xb4] sm:$0xf0]  ;;  %v2996_v25 = vor.u32 %v3884_v15, %v2995_v14  ;;  %v2757_v15 = vld [vmem:[#allocation7 + $0xf8] sm:$0xf0] }
  0x6a   :  { %1135 = vmatpush.bf16.msra.mxu1 %v2784_v8  ;;  %v3848_v8 = vld [vmem:[#allocation7 + $0x1b4] sm:$0xf0]  ;;  %v2724_v13 = vor.u32 %v3816_v5, %v2723_v4  ;;  %v3059_v4 = vld [vmem:[#allocation7 + $0x348] sm:$0xf] }
  0x6b   :  { %1148 = vmatpush.bf16.msra.mxu2 %v2912_v23  ;;  %v3844_v23 = vld [vmem:[#allocation7 + $0x194] sm:$0xf0] }
  0x6c   :  { %1161 = vmatpush.bf16.msra.mxu3 %v3040_v26  ;;  %v2836_v31 = vor.u32 %v3844_v23, %v2835_v22 }
  0x6d   :  { %1123 = vmatpush.bf16.msra.mxu0 %v2640_v18  ;;  %v2852_v18 = vor.u32 %v3848_v8, %v2851_v7  ;;  %v3900_v7 = vld [vmem:[#allocation7 + $0x354] sm:$0xf0]  ;;  %v2643_v8 = vld [vmem:[#allocation7 + $0x8] sm:$0xf] }
  0x6e   :  { %1136 = vmatpush.bf16.msra.mxu1 %v2768_v20  ;;  %v2707_v20 = vld [vmem:[#allocation7 + $0x88] sm:$0xf]  ;;  %v3060_v19 = vor.u32 %v3900_v7, %v3059_v4  ;;  %v3109_v7 = vld [vmem:[#allocation7 + $0x3b8] sm:$0xf0] }
  0x6f   :  { %1149 = vmatpush.bf16.msra.mxu2 %v2896_v29  ;;  %v2708_v28 = vor.u32 %v3812_v21, %v2707_v20  ;;  %v2979_v29 = vld [vmem:[#allocation7 + $0x2a8] sm:$0xf]  ;;  %v3864_v21 = vld [vmem:[#allocation7 + $0x234] sm:$0xf0] }
  0x70   :  { %1162 = vmatpush.bf16.msra.mxu3 %v3024_v32  ;;  %v3107_v32 = vld [vmem:[#allocation7 + $0x3a8] sm:$0xf] }
  0x71   :  { %v3108_v39 = vor.u32 %v3912_v33, %v3107_v32  ;;  %v2915_v20 = vld [vmem:[#allocation7 + $0x228] sm:$0xf]  ;;  %v2869_v32 = vld [vmem:[#allocation7 + $0x1d8] sm:$0xf0] }
  0xad   :  { %v235_v36 = vpop.f32.mrf.mxu0 }
  0xae   :  { %v236_v37 = vadd.f32 %v235_v36, %v162_v34  ;;  %v248_v38 = vpop.f32.mrf.mxu1  ;;  %v2691_v34 = vld [vmem:[#allocation7 + $0x68] sm:$0xf] }
  0xaf   :  { %v249_v41 = vadd.f32 %v248_v38, %v163_v35  ;;  %v3808_v35 = vld [vmem:[#allocation7 + $0x74] sm:$0xf0]  ;;  %v2819_v36 = vld [vmem:[#allocation7 + $0x168] sm:$0xf]  ;;  %v2980_v38 = vor.u32 %v3880_v30, %v2979_v29  ;;  %v2916_v29 = vor.u32 %v3864_v21, %v2915_v20  ;;  %v2741_v30 = vld [vmem:[#allocation7 + $0xd8] sm:$0xf0] }
  0xb0   :  { %v278_v44 = vmax.f32 %v236_v37, 0.0  ;;  %v3840_v37 = vld [vmem:[#allocation7 + $0x174] sm:$0xf0]  ;;  %v2692_v42 = vor.u32 %v3808_v35, %v2691_v34  ;;  %v2899_v34 = vld [vmem:[#allocation7 + $0x208] sm:$0xf] }
  0xb1   :  { %v279_v45 = vmax.f32 %v249_v41, 0.0  ;;  %v3876_v41 = vld [vmem:[#allocation7 + $0x294] sm:$0xf0]  ;;  %v2820_v43 = vor.u32 %v3840_v37, %v2819_v36  ;;  %v3027_v36 = vld [vmem:[#allocation7 + $0x308] sm:$0xf] }
  0xb2   :  { %v4388_v48 = vpack.c.bf16 %v278_v44, %v278_v44  ;;  %v3091_v44 = vld [vmem:[#allocation7 + $0x388] sm:$0xf]  ;;  %v2964_v51 = vor.u32 %v3876_v41, %v2963_v40  ;;  %v3860_v35 = vld [vmem:[#allocation7 + $0x214] sm:$0xf0]  ;;  %v3906_v20 = vld [vmem:[#allocation7 + $0x38c] sm:$0xf] }
  0xb3   :  { %v4390_v53 = vpack.c.bf16 %v279_v45, %v279_v45  ;;  %v3908_v45 = vld [vmem:[#allocation7 + $0x394] sm:$0xf0]  ;;  %v3093_v21 = vld [vmem:[#allocation7 + $0x398] sm:$0xf0] }
  0xb4   :  { %1072 = vmatmul.bf16.vlgmr.msrb.gmra.mxu0 %v4388_v48  ;;  %v3092_v52 = vor.u32 %v3908_v45, %v3091_v44  ;;  %v3892_v37 = vld [vmem:[#allocation7 + $0x314] sm:$0xf0]  ;;  %v3814_v44 = vld [vmem:[#allocation7 + $0xac] sm:$0xf]  ;;  %v2900_v45 = vor.u32 %v3860_v35, %v2899_v34  ;;  %v2661_v35 = vld [vmem:[#allocation7 + $0x38] sm:$0xf0] }
  0xb5   :  { %v261_v56 = vpop.f32.mrf.mxu2  ;;  %1085 = vmatmul.bf16.vlgmr.msrb.gmra.mxu1 %v4390_v53  ;;  %1168 = vmatpush.bf16.msrb.mxu0 %v2756_v47  ;;  %v237_v59 = vpop.f32.mrf.mxu0  ;;  %v3804_v47 = vld [vmem:[#allocation7 + $0x54] sm:$0xf0]  ;;  %v3798_v34 = vld [vmem:[#allocation7 + $0x2c] sm:$0xf] }
  0xb6   :  { %v262_v57 = vadd.f32 %v261_v56, %v164_v46  ;;  %v274_v58 = vpop.f32.mrf.mxu3  ;;  %1181 = vmatpush.bf16.msrb.mxu1 %v2884_v50  ;;  %v250_v1 = vpop.f32.mrf.mxu1  ;;  %v2675_v46 = vld [vmem:[#allocation7 + $0x48] sm:$0xf]  ;;  %v3836_v50 = vld [vmem:[#allocation7 + $0x154] sm:$0xf0] }
  0xb7   :  { %v275_v0 = vadd.f32 %v274_v58, %v165_v49  ;;  %v2803_v49 = vld [vmem:[#allocation7 + $0x148] sm:$0xf]  ;;  %v2676_v56 = vor.u32 %v3804_v47, %v2675_v46  ;;  %v3904_v59 = vld [vmem:[#allocation7 + $0x374] sm:$0xf0]  ;;  %v2725_v46 = vld [vmem:[#allocation7 + $0xb8] sm:$0xf0] }
  0xb8   :  { %v280_v6 = vmax.f32 %v262_v57, 0.0  ;;  %v2804_v57 = vor.u32 %v3836_v50, %v2803_v49  ;;  %v3075_v58 = vld [vmem:[#allocation7 + $0x368] sm:$0xf]  ;;  %v3846_v47 = vld [vmem:[#allocation7 + $0x1ac] sm:$0xf]  ;;  %v3028_v50 = vor.u32 %v3892_v37, %v3027_v36 }
  0xb9   :  { %v281_v9 = vmax.f32 %v275_v0, 0.0  ;;  %1169 = vmatpush.bf16.msrb.mxu0 %v2740_v60  ;;  %v2659_v60 = vld [vmem:[#allocation7 + $0x28] sm:$0xf]  ;;  %v2948_v0 = vor.u32 %v3872_v55, %v2947_v54  ;;  %v3076_v1 = vor.u32 %v3904_v59, %v3075_v58  ;;  %v2853_v49 = vld [vmem:[#allocation7 + $0x1b8] sm:$0xf0] }
  0xba   :  { %v4394_v11 = vpack.c.bf16 %v280_v6, %v280_v6  ;;  %1182 = vmatpush.bf16.msrb.mxu1 %v2868_v2  ;;  %v2931_v2 = vld [vmem:[#allocation7 + $0x248] sm:$0xf]  ;;  %v2660_v5 = vor.u32 %v3800_v61, %v2659_v60  ;;  %v2788_v6 = vor.u32 %v3832_v63, %v2787_v62  ;;  %v3882_v54 = vld [vmem:[#allocation7 + $0x2cc] sm:$0xf]  ;;  %v2997_v55 = vld [vmem:[#allocation7 + $0x2d8] sm:$0xf0] }
  0xbb   :  { %v4396_v17 = vpack.c.bf16 %v281_v9, %v281_v9  ;;  %v3796_v9 = vld [vmem:[#allocation7 + $0x14] sm:$0xf0]  ;;  %v2932_v14 = vor.u32 %v3868_v3, %v2931_v2  ;;  %v3914_v58 = vld [vmem:[#allocation7 + $0x3cc] sm:$0xf]  ;;  %v3125_v59 = vld [vmem:[#allocation7 + $0x3d8] sm:$0xf0] }
  0xbc   :  { %1098 = vmatmul.bf16.vlgmr.msrb.gmra.mxu2 %v4394_v11  ;;  %v2644_v22 = vor.u32 %v3796_v9, %v2643_v8  ;;  %v3810_v60 = vld [vmem:[#allocation7 + $0x8c] sm:$0xf]  ;;  %v2709_v61 = vld [vmem:[#allocation7 + $0x98] sm:$0xf0] }
  0xbd   :  { %1111 = vmatmul.bf16.vlgmr.msrb.gmra.mxu3 %v4396_v17  ;;  %1194 = vmatpush.bf16.msrb.mxu2 %v3012_v10  ;;  %v263_v24 = vpop.f32.mrf.mxu2  ;;  %v2771_v10 = vld [vmem:[#allocation7 + $0x108] sm:$0xf]  ;;  %v3842_v62 = vld [vmem:[#allocation7 + $0x18c] sm:$0xf]  ;;  %v2837_v63 = vld [vmem:[#allocation7 + $0x198] sm:$0xf0]  ;;  %v2712_v4 = vor.u32 %v3810_v60, %v2709_v61 }
  0xbe   :  { %1207 = vmatpush.bf16.msrb.mxu3 %v3140_v12  ;;  %v276_v26 = vpop.f32.mrf.mxu3  ;;  %1170 = vmatpush.bf16.msrb.mxu0 %v2724_v13  ;;  %v3828_v12 = vld [vmem:[#allocation7 + $0x114] sm:$0xf0]  ;;  %v3822_v13 = vld [vmem:[#allocation7 + $0xec] sm:$0xf]  ;;  %v3043_v24 = vld [vmem:[#allocation7 + $0x328] sm:$0xf] }
  0xbf   :  { %1183 = vmatpush.bf16.msrb.mxu1 %v2852_v18  ;;  %v2885_v18 = vld [vmem:[#allocation7 + $0x1f8] sm:$0xf0]  ;;  %v2772_v23 = vor.u32 %v3828_v12, %v2771_v10  ;;  %v2760_v26 = vor.u32 %v3822_v13, %v2757_v15  ;;  %v3878_v2 = vld [vmem:[#allocation7 + $0x2ac] sm:$0xf] }
  0xc0   :  { %v2981_v3 = vld [vmem:[#allocation7 + $0x2b8] sm:$0xf0]  ;;  %v3806_v8 = vld [vmem:[#allocation7 + $0x6c] sm:$0xf] }
  0xc1   :  { %1195 = vmatpush.bf16.msrb.mxu2 %v2996_v25  ;;  %v3896_v25 = vld [vmem:[#allocation7 + $0x334] sm:$0xf0]  ;;  %v2693_v9 = vld [vmem:[#allocation7 + $0x78] sm:$0xf0]  ;;  %v3838_v10 = vld [vmem:[#allocation7 + $0x16c] sm:$0xf]  ;;  %v2984_v13 = vor.u32 %v3878_v2, %v2981_v3 }
  0xc2   :  { %1208 = vmatpush.bf16.msrb.mxu3 %v3124_v27  ;;  %1171 = vmatpush.bf16.msrb.mxu0 %v2708_v28  ;;  %v2888_v27 = vor.u32 %v3854_v16, %v2885_v18  ;;  %v3818_v28 = vld [vmem:[#allocation7 + $0xcc] sm:$0xf]  ;;  %v3044_v33 = vor.u32 %v3896_v25, %v3043_v24  ;;  %v2821_v12 = vld [vmem:[#allocation7 + $0x178] sm:$0xf0]  ;;  %v2696_v18 = vor.u32 %v3806_v8, %v2693_v9 }
  0xc3   :  { %1184 = vmatpush.bf16.msrb.mxu1 %v2836_v31  ;;  %v3850_v31 = vld [vmem:[#allocation7 + $0x1cc] sm:$0xf]  ;;  %v2744_v40 = vor.u32 %v3818_v28, %v2741_v30  ;;  %v2965_v16 = vld [vmem:[#allocation7 + $0x298] sm:$0xf0] }
  0xc4   :  { %1124 = vmatmul.bf16.vlgmr.msra.gmra.mxu0 %v4388_v48  ;;  %v2872_v41 = vor.u32 %v3850_v31, %v2869_v32  ;;  %v3874_v15 = vld [vmem:[#allocation7 + $0x28c] sm:$0xf]  ;;  %v2805_v25 = vld [vmem:[#allocation7 + $0x158] sm:$0xf0] }
  0xc5   :  { %1196 = vmatpush.bf16.msrb.mxu2 %v2980_v38  ;;  %1137 = vmatmul.bf16.vlgmr.msra.gmra.mxu1 %v4390_v53  ;;  %v3886_v38 = vld [vmem:[#allocation7 + $0x2ec] sm:$0xf]  ;;  %v2789_v37 = vld [vmem:[#allocation7 + $0x138] sm:$0xf0] }
  0xc6   :  { %1209 = vmatpush.bf16.msrb.mxu3 %v3108_v39  ;;  %1172 = vmatpush.bf16.msrb.mxu0 %v2692_v42  ;;  %v3013_v39 = vld [vmem:[#allocation7 + $0x2f8] sm:$0xf0]  ;;  %v3918_v42 = vld [vmem:[#allocation7 + $0x3ec] sm:$0xf] }
  0xc7   :  { %1185 = vmatpush.bf16.msrb.mxu1 %v2820_v43  ;;  %v3141_v43 = vld [vmem:[#allocation7 + $0x3f8] sm:$0xf0]  ;;  %v3834_v24 = vld [vmem:[#allocation7 + $0x14c] sm:$0xf] }
  0xc8   :  { %v3870_v28 = vld [vmem:[#allocation7 + $0x26c] sm:$0xf]  ;;  %v2808_v31 = vor.u32 %v3834_v24, %v2805_v25  ;;  %v2901_v9 = vld [vmem:[#allocation7 + $0x218] sm:$0xf0]  ;;  %v3499_v25 = vld [vmem:[#allocation10 + $0x2c0] sm:$0xf] }
  0xc9   :  { %1197 = vmatpush.bf16.msrb.mxu2 %v2964_v51  ;;  %v3016_v51 = vor.u32 %v3886_v38, %v3013_v39  ;;  %v3902_v32 = vld [vmem:[#allocation7 + $0x36c] sm:$0xf] }
  0xca   :  { %1210 = vmatpush.bf16.msrb.mxu3 %v3092_v52  ;;  %1173 = vmatpush.bf16.msrb.mxu0 %v2676_v56  ;;  %v3144_v52 = vor.u32 %v3918_v42, %v3141_v43  ;;  %v2728_v56 = vor.u32 %v3814_v44, %v2725_v46  ;;  %v3830_v36 = vld [vmem:[#allocation7 + $0x12c] sm:$0xf]  ;;  %v2664_v43 = vor.u32 %v3798_v34, %v2661_v35  ;;  %v3935_v34 = vld [vmem:[#allocation10 + $0x6c] sm:$0xf0] }
  0xcb   :  { %1186 = vmatpush.bf16.msrb.mxu1 %v2804_v57  ;;  %v2856_v57 = vor.u32 %v3846_v47, %v2853_v49  ;;  %v3898_v42 = vld [vmem:[#allocation7 + $0x34c] sm:$0xf]  ;;  %v2792_v44 = vor.u32 %v3830_v36, %v2789_v37  ;;  %v2645_v47 = vld [vmem:[#allocation7 + $0x18] sm:$0xf0]  ;;  %v3323_v36 = vld [vmem:[#allocation10 + $0x160] sm:$0xf] }
  0xcc   :  { %1150 = vmatmul.bf16.vlgmr.msra.gmra.mxu2 %v4394_v11  ;;  %v3794_v46 = vld [vmem:[#allocation7 + $0xc] sm:$0xf]  ;;  %v3967_v37 = vld [vmem:[#allocation10 + $0x16c] sm:$0xf0] }
  0xcd   :  { %1163 = vmatmul.bf16.vlgmr.msra.gmra.mxu3 %v4396_v17  ;;  %1198 = vmatpush.bf16.msrb.mxu2 %v2948_v0  ;;  %v3000_v0 = vor.u32 %v3882_v54, %v2997_v55  ;;  %v3826_v49 = vld [vmem:[#allocation7 + $0x10c] sm:$0xf]  ;;  %v3951_v54 = vld [vmem:[#allocation10 + $0xec] sm:$0xf0]  ;;  %v3387_v55 = vld [vmem:[#allocation10 + $0x1e0] sm:$0xf]  ;;  %v2648_v60 = vor.u32 %v3794_v46, %v2645_v47 }
  0xce   :  { %1211 = vmatpush.bf16.msrb.mxu3 %v3076_v1  ;;  %1174 = vmatpush.bf16.msrb.mxu0 %v2660_v5  ;;  %v3128_v1 = vor.u32 %v3914_v58, %v3125_v59  ;;  %v2840_v5 = vor.u32 %v3842_v62, %v2837_v63  ;;  %v3862_v58 = vld [vmem:[#allocation7 + $0x22c] sm:$0xf]  ;;  %v2917_v59 = vld [vmem:[#allocation7 + $0x238] sm:$0xf0]  ;;  %v3147_v47 = vld [vmem:[#allocation10] sm:$0xf] }
  0xcf   :  { %1187 = vmatpush.bf16.msrb.mxu1 %v2788_v6  ;;  %v3910_v6 = vld [vmem:[#allocation7 + $0x3ac] sm:$0xf]  ;;  %v3045_v63 = vld [vmem:[#allocation7 + $0x338] sm:$0xf0]  ;;  %v2920_v3 = vor.u32 %v3862_v58, %v2917_v59  ;;  %v3941_v58 = vld [vmem:[#allocation10 + $0xa4] sm:$0xf] }
  0xd0   :  { %v3894_v62 = vld [vmem:[#allocation7 + $0x32c] sm:$0xf]  ;;  %v3229_v59 = vld [vmem:[#allocation10 + $0xb0] sm:$0xf0] }
  0xd1   :  { %1199 = vmatpush.bf16.msrb.mxu2 %v2932_v14  ;;  %v3112_v14 = vor.u32 %v3910_v6, %v3109_v7  ;;  %v3979_v6 = vld [vmem:[#allocation10 + $0x1cc] sm:$0xf0]  ;;  %v3048_v7 = vor.u32 %v3894_v62, %v3045_v63  ;;  %v3858_v8 = vld [vmem:[#allocation7 + $0x20c] sm:$0xf]  ;;  %v3483_v63 = vld [vmem:[#allocation10 + $0x2a0] sm:$0xf] }
  0xd2   :  { %1212 = vmatpush.bf16.msrb.mxu3 %v3060_v19  ;;  %1175 = vmatpush.bf16.msrb.mxu0 %v2644_v22  ;;  %v2824_v19 = vor.u32 %v3838_v10, %v2821_v12  ;;  %v3802_v22 = vld [vmem:[#allocation7 + $0x4c] sm:$0xf]  ;;  %v3029_v12 = vld [vmem:[#allocation7 + $0x318] sm:$0xf0]  ;;  %v3959_v62 = vld [vmem:[#allocation10 + $0x12c] sm:$0xf0] }
  0xd3   :  { %1188 = vmatpush.bf16.msrb.mxu1 %v2772_v23  ;;  %v2677_v23 = vld [vmem:[#allocation7 + $0x58] sm:$0xf0]  ;;  %v3890_v10 = vld [vmem:[#allocation7 + $0x30c] sm:$0xf] }
  0xd4   :  { %v2680_v30 = vor.u32 %v3802_v22, %v2677_v23  ;;  %v3355_v22 = vld [vmem:[#allocation10 + $0x1a0] sm:$0xf]  ;;  %v3975_v23 = vld [vmem:[#allocation10 + $0x1ac] sm:$0xf0] }
  0xd5   :  { %1200 = vmatpush.bf16.msrb.mxu2 %v2916_v29  ;;  %1176 = vmatmul.bf16.vlgmr.msrb.gmra.mxu0 %v4388_v48  ;;  %v2949_v29 = vld [vmem:[#allocation7 + $0x278] sm:$0xf0] }
  0xd6   :  { %1220 = vmatpush.bf16.msra.mxu0 %v2760_v26  ;;  %1213 = vmatpush.bf16.msrb.mxu3 %v3044_v33  ;;  %v2968_v26 = vor.u32 %v3874_v15, %v2965_v16  ;;  %v3077_v33 = vld [vmem:[#allocation7 + $0x378] sm:$0xf0]  ;;  %v2952_v38 = vor.u32 %v3870_v28, %v2949_v29  ;;  %v3211_v28 = vld [vmem:[#allocation10 + $0x80] sm:$0xf]  ;;  %v3939_v29 = vld [vmem:[#allocation10 + $0x8c] sm:$0xf0] }
  0xd7   :  { %1233 = vmatpush.bf16.msra.mxu1 %v2888_v27  ;;  %v3096_v27 = vor.u32 %v3906_v20, %v3093_v21  ;;  %v3080_v39 = vor.u32 %v3902_v32, %v3077_v33  ;;  %v3943_v20 = vld [vmem:[#allocation10 + $0xac] sm:$0xf0]  ;;  %v3032_v21 = vor.u32 %v3890_v10, %v3029_v12  ;;  %v3212_v33 = vor.u32 %v3939_v29, %v3211_v28  ;;  %v3435_v29 = vld [vmem:[#allocation10 + $0x240] sm:$0xf] }
  0xd8   :  { %1189 = vmatmul.bf16.vlgmr.msrb.gmra.mxu1 %v4390_v53  ;;  %v3971_v32 = vld [vmem:[#allocation10 + $0x18c] sm:$0xf0] }
  0xd9   :  { %1201 = vmatpush.bf16.msrb.mxu2 %v2900_v45  ;;  %v3061_v45 = vld [vmem:[#allocation7 + $0x358] sm:$0xf0]  ;;  %v4003_v10 = vld [vmem:[#allocation10 + $0x28c] sm:$0xf0] }
  0xda   :  { %1221 = vmatpush.bf16.msra.mxu0 %v2744_v40  ;;  %1214 = vmatpush.bf16.msrb.mxu3 %v3028_v50  ;;  %v3866_v40 = vld [vmem:[#allocation7 + $0x24c] sm:$0xf]  ;;  %v2773_v50 = vld [vmem:[#allocation7 + $0x118] sm:$0xf0] }
  0xdb   :  { %1234 = vmatpush.bf16.msra.mxu1 %v2872_v41  ;;  %v2933_v41 = vld [vmem:[#allocation7 + $0x258] sm:$0xf0]  ;;  %v2776_v61 = vor.u32 %v3826_v49, %v2773_v50  ;;  %v3923_v49 = vld [vmem:[#allocation10 + $0xc] sm:$0xf0]  ;;  %v3949_v50 = vld [vmem:[#allocation10 + $0xe4] sm:$0xf] }
  0xdc   :  { %1202 = vmatmul.bf16.vlgmr.msrb.gmra.mxu2 %v4394_v11 }
  0xdd   :  { %1246 = vmatpush.bf16.msra.mxu2 %v3016_v51  ;;  %1215 = vmatmul.bf16.vlgmr.msrb.gmra.mxu3 %v4396_v17  ;;  %v3259_v51 = vld [vmem:[#allocation10 + $0xe0] sm:$0xf] }
  0xde   :  { %1259 = vmatpush.bf16.msra.mxu3 %v3144_v52  ;;  %1222 = vmatpush.bf16.msra.mxu0 %v2728_v56  ;;  %v2936_v52 = vor.u32 %v3866_v40, %v2933_v41  ;;  %v3983_v56 = vld [vmem:[#allocation10 + $0x1ec] sm:$0xf0]  ;;  %v3324_v41 = vor.u32 %v3967_v37, %v3323_v36  ;;  %v3419_v36 = vld [vmem:[#allocation10 + $0x220] sm:$0xf] }
  0xdf   :  { %1235 = vmatpush.bf16.msra.mxu1 %v2856_v57  ;;  %v3064_v57 = vor.u32 %v3898_v42, %v3061_v45  ;;  %v3388_v2 = vor.u32 %v3983_v56, %v3387_v55  ;;  %v3931_v40 = vld [vmem:[#allocation10 + $0x4c] sm:$0xf0]  ;;  %v3307_v42 = vld [vmem:[#allocation10 + $0x140] sm:$0xf]  ;;  %v3945_v55 = vld [vmem:[#allocation10 + $0xc4] sm:$0xf] }
  0xe0   :  { %v3927_v45 = vld [vmem:[#allocation10 + $0x2c] sm:$0xf0]  ;;  %v3245_v56 = vld [vmem:[#allocation10 + $0xd0] sm:$0xf0] }
  0xe1   :  { %1247 = vmatpush.bf16.msra.mxu2 %v3000_v0  ;;  %v3260_v0 = vor.u32 %v3951_v54, %v3259_v51  ;;  %v3261_v51 = vld [vmem:[#allocation10 + $0xf0] sm:$0xf0]  ;;  %v3991_v37 = vld [vmem:[#allocation10 + $0x22c] sm:$0xf0] }
  0xe2   :  { %1260 = vmatpush.bf16.msra.mxu3 %v3128_v1  ;;  %1223 = vmatpush.bf16.msra.mxu0 %v2712_v4  ;;  %v3243_v1 = vld [vmem:[#allocation10 + $0xc0] sm:$0xf]  ;;  %v3947_v4 = vld [vmem:[#allocation10 + $0xcc] sm:$0xf0]  ;;  %v3264_v54 = vor.u32 %v3949_v50, %v3261_v51  ;;  %v3325_v50 = vld [vmem:[#allocation10 + $0x170] sm:$0xf0] }
  0xe3   :  { %1236 = vmatpush.bf16.msra.mxu1 %v2840_v5  ;;  %v3371_v5 = vld [vmem:[#allocation10 + $0x1c0] sm:$0xf]  ;;  %v3244_v15 = vor.u32 %v3947_v4, %v3243_v1  ;;  %v4007_v1 = vld [vmem:[#allocation10 + $0x2ac] sm:$0xf0] }
  0xe4   :  { %v3372_v16 = vor.u32 %v3979_v6, %v3371_v5  ;;  %v3484_v4 = vor.u32 %v4007_v1, %v3483_v63  ;;  %v3275_v6 = vld [vmem:[#allocation10 + $0x100] sm:$0xf] }
  0xe5   :  { %1248 = vmatpush.bf16.msra.mxu2 %v2984_v13  ;;  %v3515_v13 = vld [vmem:[#allocation10 + $0x2e0] sm:$0xf] }
  0xe6   :  { %1261 = vmatpush.bf16.msra.mxu3 %v3112_v14  ;;  %1224 = vmatpush.bf16.msra.mxu0 %v2696_v18  ;;  %v4015_v14 = vld [vmem:[#allocation10 + $0x2ec] sm:$0xf0]  ;;  %v2904_v18 = vor.u32 %v3858_v8, %v2901_v9  ;;  %v3467_v8 = vld [vmem:[#allocation10 + $0x280] sm:$0xf] }
  0xe7   :  { %1237 = vmatpush.bf16.msra.mxu1 %v2824_v19  ;;  %v3227_v19 = vld [vmem:[#allocation10 + $0xa0] sm:$0xf]  ;;  %v3516_v24 = vor.u32 %v4015_v14, %v3515_v13  ;;  %v3468_v12 = vor.u32 %v4003_v10, %v3467_v8  ;;  %v3933_v13 = vld [vmem:[#allocation10 + $0x64] sm:$0xf]  ;;  %v3197_v14 = vld [vmem:[#allocation10 + $0x70] sm:$0xf0] }
  0xe8   :  { %v3293_v8 = vld [vmem:[#allocation10 + $0x130] sm:$0xf0] }
  0xe9   :  { %1249 = vmatpush.bf16.msra.mxu2 %v2968_v26  ;;  %v4011_v26 = vld [vmem:[#allocation10 + $0x2cc] sm:$0xf0] }
  0xea   :  { %1262 = vmatpush.bf16.msra.mxu3 %v3096_v27  ;;  %1225 = vmatpush.bf16.msra.mxu0 %v2680_v30  ;;  %v3228_v27 = vor.u32 %v3943_v20, %v3227_v19  ;;  %v3356_v30 = vor.u32 %v3975_v23, %v3355_v22  ;;  %v3451_v19 = vld [vmem:[#allocation10 + $0x260] sm:$0xf]  ;;  %v3999_v20 = vld [vmem:[#allocation10 + $0x26c] sm:$0xf0]  ;;  %v3929_v23 = vld [vmem:[#allocation10 + $0x44] sm:$0xf] }
  0xeb   :  { %1238 = vmatpush.bf16.msra.mxu1 %v2808_v31  ;;  %v3339_v31 = vld [vmem:[#allocation10 + $0x180] sm:$0xf]  ;;  %v3452_v22 = vor.u32 %v3999_v20, %v3451_v19  ;;  %v3953_v20 = vld [vmem:[#allocation10 + $0x104] sm:$0xf] }
  0xec   :  { %v3340_v35 = vor.u32 %v3971_v32, %v3339_v31  ;;  %v3925_v32 = vld [vmem:[#allocation10 + $0x24] sm:$0xf] }
  0xed   :  { %1250 = vmatpush.bf16.msra.mxu2 %v2952_v38 }
  0xee   :  { %1263 = vmatpush.bf16.msra.mxu3 %v3080_v39  ;;  %1226 = vmatpush.bf16.msra.mxu0 %v2664_v43  ;;  %v3179_v39 = vld [vmem:[#allocation10 + $0x40] sm:$0xf]  ;;  %v3963_v43 = vld [vmem:[#allocation10 + $0x14c] sm:$0xf0] }
  0xef   :  { %1239 = vmatpush.bf16.msra.mxu1 %v2792_v44  ;;  %v3163_v44 = vld [vmem:[#allocation10 + $0x20] sm:$0xf] }
  0xf0   :  { %v3164_v46 = vor.u32 %v3927_v45, %v3163_v44  ;;  %v3403_v44 = vld [vmem:[#allocation10 + $0x200] sm:$0xf]  ;;  %v3987_v45 = vld [vmem:[#allocation10 + $0x20c] sm:$0xf0] }
  0xf1   :  { %1251 = vmatpush.bf16.msra.mxu2 %v2936_v52  ;;  %v3148_v52 = vor.u32 %v3923_v49, %v3147_v47  ;;  %v4047_v47 = vld [vmem:[#allocation10 + $0x3ec] sm:$0xf0]  ;;  %v3965_v49 = vld [vmem:[#allocation10 + $0x164] sm:$0xf] }
  0xf2   :  { %1264 = vmatpush.bf16.msra.mxu3 %v3064_v57  ;;  %1227 = vmatpush.bf16.msra.mxu0 %v2648_v60  ;;  %v3248_v57 = vor.u32 %v3945_v55, %v3245_v56  ;;  %v3232_v60 = vor.u32 %v3941_v58, %v3229_v59  ;;  %v3517_v55 = vld [vmem:[#allocation10 + $0x2f0] sm:$0xf0]  ;;  %v4043_v58 = vld [vmem:[#allocation10 + $0x3cc] sm:$0xf0] }
  0xf3   :  { %1240 = vmatpush.bf16.msra.mxu1 %v2776_v61  ;;  %v3291_v61 = vld [vmem:[#allocation10 + $0x120] sm:$0xf] }
  0xf5   :  { %1252 = vmatpush.bf16.msra.mxu2 %v2920_v3  ;;  %1228 = vmatmul.bf16.vlgmr.msra.gmra.mxu0 %v4388_v48  ;;  %v3500_v48 = vor.u32 %v4011_v26, %v3499_v25  ;;  %v3213_v3 = vld [vmem:[#allocation10 + $0x90] sm:$0xf0]  ;;  %v3977_v25 = vld [vmem:[#allocation10 + $0x1c4] sm:$0xf] }
  0xf6   :  { %2058 = vmatpush.bf16.msrb.mxu0 %v3260_v0  ;;  %1265 = vmatpush.bf16.msra.mxu3 %v3048_v7  ;;  %v3292_v0 = vor.u32 %v3959_v62, %v3291_v61  ;;  %v3955_v7 = vld [vmem:[#allocation10 + $0x10c] sm:$0xf0]  ;;  %v3309_v61 = vld [vmem:[#allocation10 + $0x150] sm:$0xf0]  ;;  %v4009_v62 = vld [vmem:[#allocation10 + $0x2c4] sm:$0xf] }
  0xf7   :  { %2071 = vmatpush.bf16.msrb.mxu1 %v3388_v2  ;;  %v3937_v2 = vld [vmem:[#allocation10 + $0x84] sm:$0xf]  ;;  %v3276_v9 = vor.u32 %v3955_v7, %v3275_v6 }
  0xf8   :  { %1241 = vmatmul.bf16.vlgmr.msra.gmra.mxu1 %v4390_v53  ;;  %v3195_v53 = vld [vmem:[#allocation10 + $0x60] sm:$0xf]  ;;  %v3216_v5 = vor.u32 %v3937_v2, %v3213_v3  ;;  %v4412_v2 = vld [vmem:[#allocation9] sm:$0xf]  ;;  %v3957_v7 = vld [vmem:[#allocation10 + $0x124] sm:$0xf] }
  0xf9   :  { %1253 = vmatpush.bf16.msra.mxu2 %v2904_v18  ;;  %v3196_v38 = vor.u32 %v3935_v34, %v3195_v53  ;;  %v3389_v18 = vld [vmem:[#allocation10 + $0x1f0] sm:$0xf0]  ;;  %v3611_v3 = vld [vmem:[#allocation10 + $0x3a0] sm:$0xf] }
  0xfa   :  { %2059 = vmatpush.bf16.msrb.mxu0 %v3244_v15  ;;  %1266 = vmatpush.bf16.msra.mxu3 %v3032_v21  ;;  %v3981_v15 = vld [vmem:[#allocation10 + $0x1e4] sm:$0xf]  ;;  %v3357_v34 = vld [vmem:[#allocation10 + $0x1b0] sm:$0xf0] }
  0xfb   :  { %2072 = vmatpush.bf16.msrb.mxu1 %v3372_v16  ;;  %v3200_v16 = vor.u32 %v3933_v13, %v3197_v14  ;;  %v3392_v21 = vor.u32 %v3981_v15, %v3389_v18  ;;  %v3485_v13 = vld [vmem:[#allocation10 + $0x2b0] sm:$0xf0]  ;;  %v416_v14 = vperm.slane %v4412_v2, 0  ;;  %v4035_v18 = vld [vmem:[#allocation10 + $0x38c] sm:$0xf0] }
  0xfc   :  { %1254 = vmatmul.bf16.vlgmr.msra.gmra.mxu2 %v4394_v11  ;;  %v3180_v11 = vor.u32 %v3931_v40, %v3179_v39  ;;  %v3921_v39 = vld [vmem:[#allocation10 + $0x4] sm:$0xf]  ;;  %v3149_v40 = vld [vmem:[#allocation10 + $0x10] sm:$0xf0] }
  0xfd   :  { %2084 = vmatpush.bf16.msrb.mxu2 %v3516_v24  ;;  %1267 = vmatmul.bf16.vlgmr.msra.gmra.mxu3 %v4396_v17  ;;  %v3308_v17 = vor.u32 %v3963_v43, %v3307_v42  ;;  %v3181_v24 = vld [vmem:[#allocation10 + $0x50] sm:$0xf0]  ;;  %v3152_v42 = vor.u32 %v3921_v39, %v3149_v40 }
  0xfe   :  { %2060 = vmatpush.bf16.msrb.mxu0 %v3228_v27  ;;  %v3184_v26 = vor.u32 %v3929_v23, %v3181_v24  ;;  %v3373_v27 = vld [vmem:[#allocation10 + $0x1d0] sm:$0xf0] }
  0xff   :  { %2073 = vmatpush.bf16.msrb.mxu1 %v3356_v30  ;;  %v3376_v28 = vor.u32 %v3977_v25, %v3373_v27  ;;  %v3995_v30 = vld [vmem:[#allocation10 + $0x24c] sm:$0xf0]  ;;  %v3341_v43 = vld [vmem:[#allocation10 + $0x190] sm:$0xf0]  ;;  %v3579_v27 = vld [vmem:[#allocation10 + $0x360] sm:$0xf] }
 0x100   :  { %v3436_v31 = vor.u32 %v3995_v30, %v3435_v29  ;;  %v3469_v24 = vld [vmem:[#allocation10 + $0x290] sm:$0xf0] }
 0x101   :  { %2085 = vmatpush.bf16.msrb.mxu2 %v3500_v48  ;;  %v3165_v48 = vld [vmem:[#allocation10 + $0x30] sm:$0xf0] }
 0x102   :  { %2061 = vmatpush.bf16.msrb.mxu0 %v3212_v33  ;;  %v3973_v33 = vld [vmem:[#allocation10 + $0x1a4] sm:$0xf]  ;;  %v3168_v53 = vor.u32 %v3925_v32, %v3165_v48  ;;  %v3453_v32 = vld [vmem:[#allocation10 + $0x270] sm:$0xf0] }
 0x103   :  { %2074 = vmatpush.bf16.msrb.mxu1 %v3340_v35  ;;  %v3360_v35 = vor.u32 %v3973_v33, %v3357_v34  ;;  %v3563_v34 = vld [vmem:[#allocation10 + $0x340] sm:$0xf] }
 0x105   :  { %2086 = vmatpush.bf16.msrb.mxu2 %v3484_v4  ;;  %v4039_v4 = vld [vmem:[#allocation10 + $0x3ac] sm:$0xf0] }
 0x106   :  { %2062 = vmatpush.bf16.msrb.mxu0 %v3196_v38  ;;  %v3420_v38 = vor.u32 %v3991_v37, %v3419_v36  ;;  %v3612_v6 = vor.u32 %v4039_v4, %v3611_v3  ;;  %v3993_v37 = vld [vmem:[#allocation10 + $0x244] sm:$0xf] }
 0x107   :  { %2075 = vmatpush.bf16.msrb.mxu1 %v3324_v41  ;;  %v3969_v41 = vld [vmem:[#allocation10 + $0x184] sm:$0xf] }
 0x109   :  { %2087 = vmatpush.bf16.msrb.mxu2 %v3468_v12  ;;  %v3296_v12 = vor.u32 %v3957_v7, %v3293_v8 }
 0x10a   :  { %2063 = vmatpush.bf16.msrb.mxu0 %v3180_v11  ;;  %v3344_v11 = vor.u32 %v3969_v41, %v3341_v43  ;;  %v3267_v43 = vld [vmem:[#allocation10 + $0xe8] sm:$0xf] }
 0x10b   :  { %2076 = vmatpush.bf16.msrb.mxu1 %v3308_v17  ;;  %v3643_v17 = vld [vmem:[#allocation10 + $0x3e0] sm:$0xf] }
 0x10c   :  { %v3644_v51 = vor.u32 %v4047_v47, %v3643_v17 }
 0x10d   :  { %2088 = vmatpush.bf16.msrb.mxu2 %v3452_v22  ;;  %v4001_v22 = vld [vmem:[#allocation10 + $0x284] sm:$0xf] }
 0x10e   :  { %2064 = vmatpush.bf16.msrb.mxu0 %v3164_v46  ;;  %v3404_v46 = vor.u32 %v3987_v45, %v3403_v44  ;;  %2097 = vmatpush.bf16.msrb.mxu3 %v3644_v51  ;;  %v4023_v44 = vld [vmem:[#allocation10 + $0x32c] sm:$0xf0] }
 0x10f   :  { %2077 = vmatpush.bf16.msrb.mxu1 %v3292_v0  ;;  %v3501_v0 = vld [vmem:[#allocation10 + $0x2d0] sm:$0xf0] }
 0x110   :  { %v3504_v1 = vor.u32 %v4009_v62, %v3501_v0  ;;  %v3405_v0 = vld [vmem:[#allocation10 + $0x210] sm:$0xf0] }
 0x111   :  { %2089 = vmatpush.bf16.msrb.mxu2 %v3436_v31  ;;  %v3997_v31 = vld [vmem:[#allocation10 + $0x264] sm:$0xf] }
 0x112   :  { %2065 = vmatpush.bf16.msrb.mxu0 %v3148_v52  ;;  %v3328_v52 = vor.u32 %v3965_v49, %v3325_v50  ;;  %v3456_v33 = vor.u32 %v3997_v31, %v3453_v32  ;;  %v3989_v49 = vld [vmem:[#allocation10 + $0x224] sm:$0xf]  ;;  %v3421_v50 = vld [vmem:[#allocation10 + $0x230] sm:$0xf0]  ;;  %v3936_v31 = vld [vmem:[#allocation10 + $0x74] sm:$0xf0] }
 0x113   :  { %2078 = vmatpush.bf16.msrb.mxu1 %v3276_v9  ;;  %v4005_v9 = vld [vmem:[#allocation10 + $0x2a4] sm:$0xf]  ;;  %v3395_v32 = vld [vmem:[#allocation10 + $0x1e8] sm:$0xf] }
 0x114   :  { %v3488_v15 = vor.u32 %v4005_v9, %v3485_v13  ;;  %v3235_v9 = vld [vmem:[#allocation10 + $0xa8] sm:$0xf]  ;;  %v3944_v13 = vld [vmem:[#allocation10 + $0xb4] sm:$0xf0] }
 0x115   :  { %2090 = vmatpush.bf16.msrb.mxu2 %v3420_v38  ;;  %v3437_v38 = vld [vmem:[#allocation10 + $0x250] sm:$0xf0] }
 0x116   :  { %2110 = vmatpush.bf16.msra.mxu0 %v3264_v54  ;;  %v4013_v54 = vld [vmem:[#allocation10 + $0x2e4] sm:$0xf]  ;;  %v3440_v40 = vor.u32 %v3993_v37, %v3437_v38 }
 0x117   :  { %2123 = vmatpush.bf16.msra.mxu1 %v3392_v21  ;;  %v3520_v56 = vor.u32 %v4013_v54, %v3517_v55  ;;  %v3277_v21 = vld [vmem:[#allocation10 + $0x110] sm:$0xf0]  ;;  %v417_v55 = vperm.slane %v4412_v2, 1 }
 0x118   :  { %v3280_v23 = vor.u32 %v3953_v20, %v3277_v21  ;;  %v3219_v20 = vld [vmem:[#allocation10 + $0x88] sm:$0xf] }
 0x119   :  { %2091 = vmatpush.bf16.msrb.mxu2 %v3404_v46  ;;  %v3952_v46 = vld [vmem:[#allocation10 + $0xf4] sm:$0xf0] }
 0x11a   :  { %2111 = vmatpush.bf16.msra.mxu0 %v3248_v57  ;;  %v3627_v57 = vld [vmem:[#allocation10 + $0x3c0] sm:$0xf] }
 0x11b   :  { %2124 = vmatpush.bf16.msra.mxu1 %v3376_v28  ;;  %v3628_v59 = vor.u32 %v4043_v58, %v3627_v57  ;;  %v4031_v28 = vld [vmem:[#allocation10 + $0x36c] sm:$0xf0]  ;;  %v3268_v57 = vor.u32 %v3952_v46, %v3267_v43  ;;  %v3948_v58 = vld [vmem:[#allocation10 + $0xd4] sm:$0xf0]  ;;  %v3379_v43 = vld [vmem:[#allocation10 + $0x1c8] sm:$0xf] }
 0x11c   :  { %v3580_v30 = vor.u32 %v4031_v28, %v3579_v27  ;;  %v418_v46 = vperm.slane %v4412_v2, 2 }
 0x11d   :  { %2136 = vmatpush.bf16.msra.mxu2 %v3520_v56  ;;  %2098 = vmatpush.bf16.msrb.mxu3 %v3628_v59  ;;  %v3251_v56 = vld [vmem:[#allocation10 + $0xc8] sm:$0xf]  ;;  %v3531_v59 = vld [vmem:[#allocation10 + $0x300] sm:$0xf] }
 0x11e   :  { %2112 = vmatpush.bf16.msra.mxu0 %v3232_v60  ;;  %v3961_v60 = vld [vmem:[#allocation10 + $0x144] sm:$0xf]  ;;  %v3252_v8 = vor.u32 %v3948_v58, %v3251_v56  ;;  %v3363_v56 = vld [vmem:[#allocation10 + $0x1a8] sm:$0xf] }
 0x11f   :  { %2125 = vmatpush.bf16.msra.mxu1 %v3360_v35  ;;  %v3312_v63 = vor.u32 %v3961_v60, %v3309_v61  ;;  %v4027_v35 = vld [vmem:[#allocation10 + $0x34c] sm:$0xf0]  ;;  %v4025_v58 = vld [vmem:[#allocation10 + $0x344] sm:$0xf] }
 0x120   :  { %v3564_v36 = vor.u32 %v4027_v35, %v3563_v34  ;;  %v4019_v60 = vld [vmem:[#allocation10 + $0x30c] sm:$0xf0]  ;;  %v3597_v34 = vld [vmem:[#allocation10 + $0x390] sm:$0xf0] }
 0x121   :  { %2137 = vmatpush.bf16.msra.mxu2 %v3504_v1  ;;  %2099 = vmatpush.bf16.msrb.mxu3 %v3612_v6  ;;  %v3532_v62 = vor.u32 %v4019_v60, %v3531_v59  ;;  %v4045_v1 = vld [vmem:[#allocation10 + $0x3e4] sm:$0xf]  ;;  %v3565_v59 = vld [vmem:[#allocation10 + $0x350] sm:$0xf0] }
 0x122   :  { %2113 = vmatpush.bf16.msra.mxu0 %v3216_v5 }
 0x123   :  { %2126 = vmatpush.bf16.msra.mxu1 %v3344_v11  ;;  %v3547_v11 = vld [vmem:[#allocation10 + $0x320] sm:$0xf] }
 0x124   :  { %v3548_v47 = vor.u32 %v4023_v44, %v3547_v11  ;;  %v3980_v44 = vld [vmem:[#allocation10 + $0x1d4] sm:$0xf0] }
 0x125   :  { %2138 = vmatpush.bf16.msra.mxu2 %v3488_v15  ;;  %v3629_v15 = vld [vmem:[#allocation10 + $0x3d0] sm:$0xf0] }
 0x126   :  { %2114 = vmatpush.bf16.msra.mxu0 %v3200_v16  ;;  %v3595_v16 = vld [vmem:[#allocation10 + $0x380] sm:$0xf] }
 0x127   :  { %2127 = vmatpush.bf16.msra.mxu1 %v3328_v52  ;;  %v3596_v19 = vor.u32 %v4035_v18, %v3595_v16  ;;  %v3424_v52 = vor.u32 %v3989_v49, %v3421_v50 }
 0x129   :  { %2100 = vmatpush.bf16.msrb.mxu3 %v3596_v19  ;;  %v3236_v19 = vor.u32 %v3944_v13, %v3235_v9  ;;  %v3549_v9 = vld [vmem:[#allocation10 + $0x330] sm:$0xf0]  ;;  %v3269_v13 = vld [vmem:[#allocation10 + $0xf8] sm:$0xf0] }
 0x12a   :  { %2115 = vmatpush.bf16.msra.mxu0 %v3184_v26  ;;  %v3472_v26 = vor.u32 %v4001_v22, %v3469_v24  ;;  %v3940_v22 = vld [vmem:[#allocation10 + $0x94] sm:$0xf0]  ;;  %v3613_v24 = vld [vmem:[#allocation10 + $0x3b0] sm:$0xf0] }
 0x12b   :  { %2128 = vmatpush.bf16.msra.mxu1 %v3312_v63  ;;  %v3985_v63 = vld [vmem:[#allocation10 + $0x204] sm:$0xf] }
 0x12c   :  { %2139 = vmatpush.bf16.msra.mxu2 %v3472_v26  ;;  %v3408_v4 = vor.u32 %v3985_v63, %v3405_v0  ;;  %v3568_v63 = vor.u32 %v4025_v58, %v3565_v59  ;;  %v3475_v58 = vld [vmem:[#allocation10 + $0x288] sm:$0xf]  ;;  %v4004_v59 = vld [vmem:[#allocation10 + $0x294] sm:$0xf0] }
 0x12d   :  { %2101 = vmatpush.bf16.msrb.mxu3 %v3580_v30  ;;  %v3203_v30 = vld [vmem:[#allocation10 + $0x68] sm:$0xf] }
 0x12e   :  { %2116 = vmatpush.bf16.msra.mxu0 %v3168_v53 }
 0x12f   :  { %2129 = vmatpush.bf16.msra.mxu1 %v3296_v12 }
 0x130   :  { %2140 = vmatpush.bf16.msra.mxu2 %v3456_v33  ;;  %v3984_v33 = vld [vmem:[#allocation10 + $0x1f4] sm:$0xf0] }
 0x131   :  { %v1073_v5 = vpop.f32.mrf.mxu0  ;;  %2102 = vmatpush.bf16.msrb.mxu3 %v3564_v36 }
 0x132   :  { %2117 = vmatpush.bf16.msra.mxu0 %v3152_v42  ;;  %v1086_v10 = vpop.f32.mrf.mxu1  ;;  %v1074_v25 = vadd.f32 %v1073_v5, %v416_v14  ;;  %v3645_v5 = vld [vmem:[#allocation10 + $0x3f0] sm:$0xf0]  ;;  %v4041_v14 = vld [vmem:[#allocation10 + $0x3c4] sm:$0xf] }
 0x133   :  { %2130 = vmatpush.bf16.msra.mxu1 %v3280_v23  ;;  %v3648_v7 = vor.u32 %v4045_v1, %v3645_v5  ;;  %v3632_v18 = vor.u32 %v4041_v14, %v3629_v15  ;;  %v4037_v23 = vld [vmem:[#allocation10 + $0x3a4] sm:$0xf]  ;;  %v3924_v5 = vld [vmem:[#allocation10 + $0x14] sm:$0xf0] }
 0x134   :  { %v1087_v53 = vadd.f32 %v1086_v10, %v1074_v25  ;;  %2141 = vmatpush.bf16.msra.mxu2 %v3440_v40  ;;  %v3616_v26 = vor.u32 %v4037_v23, %v3613_v24  ;;  %v3396_v40 = vor.u32 %v3984_v33, %v3395_v32  ;;  %v3523_v24 = vld [vmem:[#allocation10 + $0x2e8] sm:$0xf] }
 0x135   :  { %2103 = vmatpush.bf16.msrb.mxu3 %v3548_v47 }
 0x138   :  { %2142 = vmatpush.bf16.msra.mxu2 %v3424_v52  ;;  %v3380_v52 = vor.u32 %v3980_v44, %v3379_v43 }
 0x139   :  { %v1075_v29 = vpop.f32.mrf.mxu0  ;;  %2104 = vmatpush.bf16.msrb.mxu3 %v3532_v62 }
 0x13a   :  { %v1088_v48 = vpop.f32.mrf.mxu1  ;;  %v3220_v29 = vor.u32 %v3940_v22, %v3219_v20  ;;  %v3968_v22 = vld [vmem:[#allocation10 + $0x174] sm:$0xf0] }
 0x13c   :  { %2143 = vmatpush.bf16.msra.mxu2 %v3408_v4  ;;  %v3155_v4 = vld [vmem:[#allocation10 + $0x8] sm:$0xf] }
 0x13d   :  { %2149 = vmatpush.bf16.msra.mxu3 %v3648_v7  ;;  %v3972_v7 = vld [vmem:[#allocation10 + $0x194] sm:$0xf0] }
 0x13f   :  { %v1099_v39 = vpop.f32.mrf.mxu2 }
 0x140   :  { %v1100_v41 = vadd.f32 %v1099_v39, %v1087_v53  ;;  %v1112_v42 = vpop.f32.mrf.mxu3  ;;  %v4033_v53 = vld [vmem:[#allocation10 + $0x384] sm:$0xf]  ;;  %v3204_v39 = vor.u32 %v3936_v31, %v3203_v30  ;;  %v3253_v30 = vld [vmem:[#allocation10 + $0xd8] sm:$0xf0] }
 0x141   :  { %v1125_v17 = vpop.f32.mrf.mxu0  ;;  %2150 = vmatpush.bf16.msra.mxu3 %v3632_v18  ;;  %v3600_v36 = vor.u32 %v4033_v53, %v3597_v34  ;;  %v3315_v34 = vld [vmem:[#allocation10 + $0x148] sm:$0xf] }
 0x142   :  { %v1113_v45 = vadd.f32 %v1112_v42, %v1100_v41  ;;  %v1138_v51 = vpop.f32.mrf.mxu1  ;;  %v1126_v10 = vadd.f32 %v1125_v17, %v417_v55  ;;  %v3187_v41 = vld [vmem:[#allocation10 + $0x48] sm:$0xf]  ;;  %v3932_v42 = vld [vmem:[#allocation10 + $0x54] sm:$0xf0]  ;;  %v3581_v17 = vld [vmem:[#allocation10 + $0x370] sm:$0xf0] }
 0x143   :  { %v3928_v55 = vld [vmem:[#allocation10 + $0x34] sm:$0xf0] }
 0x144   :  { %v1272_v54 = vmax.f32 %v1113_v45, 0.0  ;;  %v1139_v21 = vadd.f32 %v1138_v51, %v1126_v10  ;;  %v4029_v45 = vld [vmem:[#allocation10 + $0x364] sm:$0xf]  ;;  %v3188_v51 = vor.u32 %v3932_v42, %v3187_v41 }
 0x145   :  { %2151 = vmatpush.bf16.msra.mxu3 %v3616_v26  ;;  %v3584_v49 = vor.u32 %v4029_v45, %v3581_v17  ;;  %v3533_v26 = vld [vmem:[#allocation10 + $0x310] sm:$0xf0]  ;;  %v3299_v17 = vld [vmem:[#allocation10 + $0x128] sm:$0xf] }
 0x146   :  { %v4416_v61 = vpack.c.bf16 %v1272_v54, %v1272_v54  ;;  %v3171_v54 = vld [vmem:[#allocation10 + $0x28] sm:$0xf] }
 0x147   :  { %v1101_v3 = vpop.f32.mrf.mxu2  ;;  %v3172_v1 = vor.u32 %v3928_v55, %v3171_v54 }
 0x148   :  { %v1114_v6 = vpop.f32.mrf.mxu3  ;;  %2066 = vmatmul.bf16.vlgmr.msrb.gmra.mxu0 %v4416_v61 }
 0x149   :  { %2162 = vmatpush.bf16.msrb.mxu0 %v3268_v57  ;;  %v1127_v12 = vpop.f32.mrf.mxu0  ;;  %2152 = vmatpush.bf16.msra.mxu3 %v3600_v36  ;;  %v3976_v57 = vld [vmem:[#allocation10 + $0x1b4] sm:$0xf0]  ;;  %v3347_v6 = vld [vmem:[#allocation10 + $0x188] sm:$0xf] }
 0x14a   :  { %v1140_v16 = vpop.f32.mrf.mxu1  ;;  %v3364_v3 = vor.u32 %v3976_v57, %v3363_v56  ;;  %v3950_v12 = vld [vmem:[#allocation10 + $0xec] sm:$0xf]  ;;  %v3348_v20 = vor.u32 %v3972_v7, %v3347_v6  ;;  %v3507_v36 = vld [vmem:[#allocation10 + $0x2c8] sm:$0xf]  ;;  %v3956_v57 = vld [vmem:[#allocation10 + $0x114] sm:$0xf0]  ;;  %v3476_v6 = vor.u32 %v4004_v59, %v3475_v58 }
 0x14b   :  { %v3272_v23 = vor.u32 %v3950_v12, %v3269_v13  ;;  %v3283_v56 = vld [vmem:[#allocation10 + $0x108] sm:$0xf]  ;;  %v3930_v12 = vld [vmem:[#allocation10 + $0x4c] sm:$0xf]  ;;  %v3189_v13 = vld [vmem:[#allocation10 + $0x58] sm:$0xf0] }
 0x14c   :  { %v3635_v59 = vld [vmem:[#allocation10 + $0x3c8] sm:$0xf] }
 0x14d   :  { %2163 = vmatpush.bf16.msrb.mxu0 %v3252_v8  ;;  %2153 = vmatpush.bf16.msra.mxu3 %v3584_v49  ;;  %v4021_v8 = vld [vmem:[#allocation10 + $0x324] sm:$0xf]  ;;  %v4008_v49 = vld [vmem:[#allocation10 + $0x2b4] sm:$0xf0] }
 0x14e   :  { %v3552_v14 = vor.u32 %v4021_v8, %v3549_v9  ;;  %v3459_v8 = vld [vmem:[#allocation10 + $0x268] sm:$0xf] }
 0x14f   :  { %v1151_v25 = vpop.f32.mrf.mxu2 }
 0x150   :  { %v1152_v27 = vadd.f32 %v1151_v25, %v1139_v21  ;;  %v1164_v28 = vpop.f32.mrf.mxu3  ;;  %v3331_v21 = vld [vmem:[#allocation10 + $0x168] sm:$0xf]  ;;  %v4017_v25 = vld [vmem:[#allocation10 + $0x304] sm:$0xf] }
 0x151   :  { %2164 = vmatpush.bf16.msrb.mxu0 %v3236_v19  ;;  %2154 = vmatpush.bf16.msra.mxu3 %v3568_v63  ;;  %v3156_v19 = vor.u32 %v3924_v5, %v3155_v4  ;;  %v3536_v31 = vor.u32 %v4017_v25, %v3533_v26  ;;  %v3284_v4 = vor.u32 %v3956_v57, %v3283_v56  ;;  %v419_v5 = vperm.slane %v4412_v2, 3  ;;  %v3974_v25 = vld [vmem:[#allocation10 + $0x1ac] sm:$0xf]  ;;  %v3365_v26 = vld [vmem:[#allocation10 + $0x1b8] sm:$0xf0] }
 0x152   :  { %v1165_v48 = vadd.f32 %v1164_v28, %v1152_v27  ;;  %v1177_v35 = vpop.f32.mrf.mxu0  ;;  %v4016_v28 = vld [vmem:[#allocation10 + $0x2f4] sm:$0xf0] }
 0x153   :  { %v1178_v60 = vadd.f32 %v1177_v35, %v418_v46  ;;  %v3524_v33 = vor.u32 %v4016_v28, %v3523_v24  ;;  %v3964_v35 = vld [vmem:[#allocation10 + $0x154] sm:$0xf0] }
 0x154   :  { %v1273_v37 = vmax.f32 %v1165_v48, 0.0  ;;  %v3332_v48 = vor.u32 %v3968_v22, %v3331_v21  ;;  %v3316_v43 = vor.u32 %v3964_v35, %v3315_v34  ;;  %v3960_v46 = vld [vmem:[#allocation10 + $0x134] sm:$0xf0]  ;;  %v3926_v22 = vld [vmem:[#allocation10 + $0x2c] sm:$0xf] }
 0x155   :  { %v1190_v38 = vpop.f32.mrf.mxu1  ;;  %2165 = vmatpush.bf16.msrb.mxu0 %v3220_v29  ;;  %2155 = vmatpush.bf16.msra.mxu3 %v3552_v14  ;;  %v3946_v29 = vld [vmem:[#allocation10 + $0xcc] sm:$0xf]  ;;  %v3996_v21 = vld [vmem:[#allocation10 + $0x254] sm:$0xf0] }
 0x156   :  { %v4419_v11 = vpack.c.bf16 %v1273_v37, %v1273_v37  ;;  %v1191_v10 = vadd.f32 %v1190_v38, %v1178_v60  ;;  %v3256_v53 = vor.u32 %v3946_v29, %v3253_v30  ;;  %v4012_v38 = vld [vmem:[#allocation10 + $0x2d4] sm:$0xf0]  ;;  %v3934_v60 = vld [vmem:[#allocation10 + $0x6c] sm:$0xf]  ;;  %v3427_v30 = vld [vmem:[#allocation10 + $0x228] sm:$0xf] }
 0x157   :  { %v1153_v47 = vpop.f32.mrf.mxu2  ;;  %v3508_v44 = vor.u32 %v4012_v38, %v3507_v36  ;;  %v3978_v14 = vld [vmem:[#allocation10 + $0x1cc] sm:$0xf]  ;;  %v3349_v36 = vld [vmem:[#allocation10 + $0x198] sm:$0xf0] }
 0x158   :  { %v1166_v50 = vpop.f32.mrf.mxu3  ;;  %2079 = vmatmul.bf16.vlgmr.msrb.gmra.mxu1 %v4419_v11  ;;  %2118 = vmatmul.bf16.vlgmr.msra.gmra.mxu0 %v4416_v61  ;;  %v3491_v47 = vld [vmem:[#allocation10 + $0x2a8] sm:$0xf]  ;;  %v3970_v35 = vld [vmem:[#allocation10 + $0x18c] sm:$0xf] }
 0x159   :  { %2166 = vmatpush.bf16.msrb.mxu0 %v3204_v39  ;;  %2175 = vmatpush.bf16.msrb.mxu1 %v3396_v40  ;;  %v3942_v39 = vld [vmem:[#allocation10 + $0xac] sm:$0xf]  ;;  %v3237_v40 = vld [vmem:[#allocation10 + $0xb8] sm:$0xf0]  ;;  %v3492_v54 = vor.u32 %v4008_v49, %v3491_v47 }
 0x15a   :  { %v1179_v62 = vpop.f32.mrf.mxu0  ;;  %2156 = vmatpush.bf16.msra.mxu3 %v3536_v31  ;;  %v3240_v45 = vor.u32 %v3942_v39, %v3237_v40  ;;  %v3938_v50 = vld [vmem:[#allocation10 + $0x8c] sm:$0xf]  ;;  %v3333_v49 = vld [vmem:[#allocation10 + $0x178] sm:$0xf0] }
 0x15b   :  { %v3205_v62 = vld [vmem:[#allocation10 + $0x78] sm:$0xf0]  ;;  %v3966_v47 = vld [vmem:[#allocation10 + $0x16c] sm:$0xf] }
 0x15c   :  { %v3208_v7 = vor.u32 %v3934_v60, %v3205_v62  ;;  %v3336_v57 = vor.u32 %v3966_v47, %v3333_v49  ;;  %v4044_v60 = vld [vmem:[#allocation10 + $0x3d4] sm:$0xf0]  ;;  %v3962_v62 = vld [vmem:[#allocation10 + $0x14c] sm:$0xf]  ;;  %v3653_v47 = vld [vmem:[#allocation10 + $0x3f8] sm:$0xf0] }
 0x15d   :  { %v1192_v0 = vpop.f32.mrf.mxu1  ;;  %2167 = vmatpush.bf16.msrb.mxu0 %v3188_v51  ;;  %2176 = vmatpush.bf16.msrb.mxu1 %v3380_v52  ;;  %v3221_v51 = vld [vmem:[#allocation10 + $0x98] sm:$0xf0]  ;;  %v3300_v52 = vor.u32 %v3960_v46, %v3299_v17  ;;  %v3651_v17 = vld [vmem:[#allocation10 + $0x3e8] sm:$0xf]  ;;  %v4048_v46 = vld [vmem:[#allocation10 + $0x3f4] sm:$0xf0] }
 0x15e   :  { %v3224_v55 = vor.u32 %v3938_v50, %v3221_v51  ;;  %v3982_v0 = vld [vmem:[#allocation10 + $0x1ec] sm:$0xf]  ;;  %v3525_v51 = vld [vmem:[#allocation10 + $0x2f8] sm:$0xf0] }
 0x15f   :  { %v1203_v15 = vpop.f32.mrf.mxu2  ;;  %v4014_v50 = vld [vmem:[#allocation10 + $0x2ec] sm:$0xf] }
 0x160   :  { %v1216_v16 = vpop.f32.mrf.mxu3  ;;  %v1204_v18 = vadd.f32 %v1203_v15, %v1191_v10  ;;  %v4000_v10 = vld [vmem:[#allocation10 + $0x274] sm:$0xf0]  ;;  %v3381_v15 = vld [vmem:[#allocation10 + $0x1d8] sm:$0xf0]  ;;  %v3528_v58 = vor.u32 %v4014_v50, %v3525_v51  ;;  %v4042_v51 = vld [vmem:[#allocation10 + $0x3cc] sm:$0xf] }
 0x161   :  { %2168 = vmatpush.bf16.msrb.mxu0 %v3172_v1  ;;  %2177 = vmatpush.bf16.msrb.mxu1 %v3364_v3  ;;  %v3397_v1 = vld [vmem:[#allocation10 + $0x1f8] sm:$0xf0]  ;;  %v3384_v2 = vor.u32 %v3978_v14, %v3381_v15 }
 0x162   :  { %v1217_v27 = vadd.f32 %v1216_v16, %v1204_v18  ;;  %v3400_v9 = vor.u32 %v3982_v0, %v3397_v1  ;;  %v3460_v16 = vor.u32 %v4000_v10, %v3459_v8  ;;  %v3192_v18 = vor.u32 %v3930_v12, %v3189_v13  ;;  %v3317_v0 = vld [vmem:[#allocation10 + $0x158] sm:$0xf0]  ;;  %v4010_v1 = vld [vmem:[#allocation10 + $0x2cc] sm:$0xf]  ;;  %v3619_v8 = vld [vmem:[#allocation10 + $0x3a8] sm:$0xf] }
 0x163   :  { %v3958_v10 = vld [vmem:[#allocation10 + $0x12c] sm:$0xf]  ;;  %v3301_v12 = vld [vmem:[#allocation10 + $0x138] sm:$0xf0] }
 0x164   :  { %v1274_v32 = vmax.f32 %v1217_v27, 0.0  ;;  %v4006_v13 = vld [vmem:[#allocation10 + $0x2ac] sm:$0xf]  ;;  %v3493_v14 = vld [vmem:[#allocation10 + $0x2b8] sm:$0xf0] }
 0x165   :  { %2169 = vmatpush.bf16.msrb.mxu0 %v3156_v19  ;;  %2178 = vmatpush.bf16.msrb.mxu1 %v3348_v20  ;;  %v3443_v19 = vld [vmem:[#allocation10 + $0x248] sm:$0xf] }
 0x166   :  { %v4424_v37 = vpack.c.bf16 %v1274_v32, %v1274_v32  ;;  %v3444_v28 = vor.u32 %v3996_v21, %v3443_v19  ;;  %v3368_v32 = vor.u32 %v3974_v25, %v3365_v26  ;;  %v4036_v19 = vld [vmem:[#allocation10 + $0x394] sm:$0xf0]  ;;  %v4002_v21 = vld [vmem:[#allocation10 + $0x28c] sm:$0xf]  ;;  %v3587_v26 = vld [vmem:[#allocation10 + $0x368] sm:$0xf] }
 0x167   :  { %v1205_v41 = vpop.f32.mrf.mxu2 }
 0x168   :  { %v1218_v42 = vpop.f32.mrf.mxu3  ;;  %2131 = vmatmul.bf16.vlgmr.msra.gmra.mxu1 %v4419_v11  ;;  %2170 = vmatmul.bf16.vlgmr.msrb.gmra.mxu0 %v4416_v61 }
 0x169   :  { %2214 = vmatpush.bf16.msra.mxu0 %v3272_v23  ;;  %2092 = vmatmul.bf16.vlgmr.msrb.gmra.mxu2 %v4424_v37  ;;  %v3173_v23 = vld [vmem:[#allocation10 + $0x38] sm:$0xf0]  ;;  %v3411_v42 = vld [vmem:[#allocation10 + $0x208] sm:$0xf] }
 0x16a   :  { %2179 = vmatpush.bf16.msrb.mxu1 %v3332_v48  ;;  %2188 = vmatpush.bf16.msrb.mxu2 %v3524_v33  ;;  %v3176_v29 = vor.u32 %v3926_v22, %v3173_v23  ;;  %v3992_v48 = vld [vmem:[#allocation10 + $0x234] sm:$0xf0]  ;;  %v3922_v33 = vld [vmem:[#allocation10 + $0xc] sm:$0xf]  ;;  %v3477_v22 = vld [vmem:[#allocation10 + $0x298] sm:$0xf0] }
 0x16b   :  { %v3428_v40 = vor.u32 %v3992_v48, %v3427_v30  ;;  %v3480_v25 = vor.u32 %v4002_v21, %v3477_v22  ;;  %v4028_v48 = vld [vmem:[#allocation10 + $0x354] sm:$0xf0]  ;;  %v4052_v21 = vld [vmem:[#allocation13 + $0x18] sm:$0xff] }
 0x16c   :  { %v4064_v22 = vld [vmem:[#allocation13 + $0x78] sm:$0xff] }
 0x16d   :  { %2215 = vmatpush.bf16.msra.mxu0 %v3256_v53  ;;  %v3157_v53 = vld [vmem:[#allocation10 + $0x18] sm:$0xf0] }
 0x16e   :  { %2180 = vmatpush.bf16.msrb.mxu1 %v3316_v43  ;;  %2189 = vmatpush.bf16.msrb.mxu2 %v3508_v44  ;;  %v3160_v41 = vor.u32 %v3922_v33, %v3157_v53  ;;  %v3988_v43 = vld [vmem:[#allocation10 + $0x214] sm:$0xf0]  ;;  %v3994_v33 = vld [vmem:[#allocation10 + $0x24c] sm:$0xf]  ;;  %v3445_v53 = vld [vmem:[#allocation10 + $0x258] sm:$0xf0] }
 0x171   :  { %2216 = vmatpush.bf16.msra.mxu0 %v3240_v45  ;;  %v3352_v45 = vor.u32 %v3970_v35, %v3349_v36  ;;  %v3448_v35 = vor.u32 %v3994_v33, %v3445_v53  ;;  %v3555_v36 = vld [vmem:[#allocation10 + $0x328] sm:$0xf]  ;;  %v4072_v33 = vld [vmem:[#allocation13 + $0xb8] sm:$0xff]  ;;  %v4059_v53 = vld [vmem:[#allocation13 + $0x50] sm:$0xff] }
 0x172   :  { %v1229_v63 = vpop.f32.mrf.mxu0  ;;  %2181 = vmatpush.bf16.msrb.mxu1 %v3300_v52  ;;  %2190 = vmatpush.bf16.msrb.mxu2 %v3492_v54  ;;  %v3412_v54 = vor.u32 %v3988_v43, %v3411_v42  ;;  %v3539_v43 = vld [vmem:[#allocation10 + $0x308] sm:$0xf] }
 0x173   :  { %v1230_v20 = vadd.f32 %v1229_v63, %v419_v5  ;;  %v3636_v5 = vor.u32 %v4044_v60, %v3635_v59  ;;  %v4034_v59 = vld [vmem:[#allocation10 + $0x38c] sm:$0xf]  ;;  %v3605_v60 = vld [vmem:[#allocation10 + $0x398] sm:$0xf0] }
 0x175   :  { %v1242_v3 = vpop.f32.mrf.mxu1  ;;  %2217 = vmatpush.bf16.msra.mxu0 %v3224_v55  ;;  %v3652_v55 = vor.u32 %v4048_v46, %v3651_v17  ;;  %v3413_v17 = vld [vmem:[#allocation10 + $0x218] sm:$0xf0]  ;;  %v4046_v46 = vld [vmem:[#allocation10 + $0x3ec] sm:$0xf] }
 0x176   :  { %2182 = vmatpush.bf16.msrb.mxu1 %v3284_v4  ;;  %2191 = vmatpush.bf16.msrb.mxu2 %v3476_v6  ;;  %v1243_v31 = vadd.f32 %v1242_v3, %v1230_v20  ;;  %v3509_v3 = vld [vmem:[#allocation10 + $0x2d8] sm:$0xf0]  ;;  %v3320_v6 = vor.u32 %v3962_v62, %v3317_v0  ;;  %v3954_v20 = vld [vmem:[#allocation10 + $0x10c] sm:$0xf]  ;;  %v3656_v50 = vor.u32 %v4046_v46, %v3653_v47  ;;  %v4067_v46 = vld [vmem:[#allocation13 + $0x90] sm:$0xff] }
 0x177   :  { %v3608_v62 = vor.u32 %v4034_v59, %v3605_v60  ;;  %v3589_v0 = vld [vmem:[#allocation10 + $0x378] sm:$0xf0]  ;;  %v4065_v59 = vld [vmem:[#allocation13 + $0x80] sm:$0xff] }
 0x178   :  { %v4080_v60 = vld [vmem:[#allocation13 + $0xf8] sm:$0xff] }
 0x179   :  { %2218 = vmatpush.bf16.msra.mxu0 %v3208_v7  ;;  %2183 = vmatmul.bf16.vlgmr.msrb.gmra.mxu1 %v4419_v11  ;;  %v3512_v7 = vor.u32 %v4010_v1, %v3509_v3  ;;  %v4026_v3 = vld [vmem:[#allocation10 + $0x34c] sm:$0xf] }
 0x17a   :  { %2227 = vmatpush.bf16.msra.mxu1 %v3400_v9  ;;  %v1231_v24 = vpop.f32.mrf.mxu0  ;;  %2144 = vmatmul.bf16.vlgmr.msra.gmra.mxu2 %v4424_v37  ;;  %v4040_v9 = vld [vmem:[#allocation10 + $0x3b4] sm:$0xf0] }
 0x17b   :  { %2192 = vmatpush.bf16.msrb.mxu2 %v3460_v16  ;;  %v3620_v15 = vor.u32 %v4040_v9, %v3619_v8  ;;  %v3496_v16 = vor.u32 %v4006_v13, %v3493_v14  ;;  %v4018_v9 = vld [vmem:[#allocation10 + $0x30c] sm:$0xf]  ;;  %v4056_v14 = vld [vmem:[#allocation13 + $0x38] sm:$0xff] }
 0x17d   :  { %v1244_v27 = vpop.f32.mrf.mxu1  ;;  %2219 = vmatpush.bf16.msra.mxu0 %v3192_v18  ;;  %v3603_v18 = vld [vmem:[#allocation10 + $0x388] sm:$0xf] }
 0x17e   :  { %2228 = vmatpush.bf16.msra.mxu1 %v3384_v2  ;;  %v3285_v2 = vld [vmem:[#allocation10 + $0x118] sm:$0xf0]  ;;  %v3604_v23 = vor.u32 %v4036_v19, %v3603_v18  ;;  %v4032_v27 = vld [vmem:[#allocation10 + $0x374] sm:$0xf0]  ;;  %v4054_v18 = vld [vmem:[#allocation13 + $0x28] sm:$0xff] }
 0x17f   :  { %v1255_v34 = vpop.f32.mrf.mxu2  ;;  %2193 = vmatpush.bf16.msrb.mxu2 %v3444_v28  ;;  %v3288_v24 = vor.u32 %v3954_v20, %v3285_v2  ;;  %v3998_v28 = vld [vmem:[#allocation10 + $0x26c] sm:$0xf]  ;;  %v3588_v30 = vor.u32 %v4032_v27, %v3587_v26  ;;  %v4053_v19 = vld [vmem:[#allocation13 + $0x20] sm:$0xff] }
 0x180   :  { %v1256_v38 = vadd.f32 %v1255_v34, %v1243_v31  ;;  %v1268_v39 = vpop.f32.mrf.mxu3  ;;  %v4050_v26 = vld [vmem:[#allocation13 + $0x8] sm:$0xff] }
 0x181   :  { %2220 = vmatpush.bf16.msra.mxu0 %v3176_v29  ;;  %v3461_v29 = vld [vmem:[#allocation10 + $0x278] sm:$0xf0]  ;;  %v4062_v27 = vld [vmem:[#allocation13 + $0x68] sm:$0xff] }
 0x182   :  { %v1269_v44 = vadd.f32 %v1268_v39, %v1256_v38  ;;  %2229 = vmatpush.bf16.msra.mxu1 %v3368_v32  ;;  %v3464_v31 = vor.u32 %v3998_v28, %v3461_v29  ;;  %v3571_v32 = vld [vmem:[#allocation10 + $0x348] sm:$0xf]  ;;  %v4024_v38 = vld [vmem:[#allocation10 + $0x334] sm:$0xf0]  ;;  %v3990_v39 = vld [vmem:[#allocation10 + $0x22c] sm:$0xf] }
 0x183   :  { %2194 = vmatpush.bf16.msrb.mxu2 %v3428_v40  ;;  %v3572_v34 = vor.u32 %v4028_v48, %v3571_v32  ;;  %v3429_v40 = vld [vmem:[#allocation10 + $0x238] sm:$0xf0]  ;;  %v4049_v28 = vld [vmem:[#allocation13] sm:$0xff] }
 0x184   :  { %v1275_v52 = vmax.f32 %v1269_v44, 0.0  ;;  %v3432_v42 = vor.u32 %v3990_v39, %v3429_v40  ;;  %v4020_v44 = vld [vmem:[#allocation10 + $0x314] sm:$0xf0]  ;;  %v4061_v29 = vld [vmem:[#allocation13 + $0x60] sm:$0xff]  ;;  %v4060_v48 = vld [vmem:[#allocation13 + $0x58] sm:$0xff] }
 0x185   :  { %2221 = vmatpush.bf16.msra.mxu0 %v3160_v41  ;;  %v3556_v41 = vor.u32 %v4024_v38, %v3555_v36  ;;  %v3540_v49 = vor.u32 %v4020_v44, %v3539_v43  ;;  %v4058_v38 = vld [vmem:[#allocation13 + $0x48] sm:$0xff]  ;;  %v4057_v40 = vld [vmem:[#allocation13 + $0x40] sm:$0xff] }
 0x186   :  { %v4432_v56 = vpack.c.bf16 %v1275_v52, %v1275_v52  ;;  %2230 = vmatpush.bf16.msra.mxu1 %v3352_v45  ;;  %v3986_v45 = vld [vmem:[#allocation10 + $0x20c] sm:$0xf]  ;;  %v3637_v52 = vld [vmem:[#allocation10 + $0x3d8] sm:$0xf0] }
 0x187   :  { %v1257_v63 = vpop.f32.mrf.mxu2  ;;  %2195 = vmatpush.bf16.msrb.mxu2 %v3412_v54  ;;  %v3640_v54 = vor.u32 %v4042_v51, %v3637_v52  ;;  %v4070_v39 = vld [vmem:[#allocation13 + $0xa8] sm:$0xff] }
 0x188   :  { %v1270_v4 = vpop.f32.mrf.mxu3  ;;  %2105 = vmatmul.bf16.vlgmr.msrb.gmra.mxu3 %v4432_v56  ;;  %2222 = vmatmul.bf16.vlgmr.msra.gmra.mxu0 %v4416_v61  ;;  %v3304_v61 = vor.u32 %v3958_v10, %v3301_v12  ;;  %v4030_v63 = vld [vmem:[#allocation10 + $0x36c] sm:$0xf] }
 0x189   :  { %2201 = vmatpush.bf16.msrb.mxu3 %v3652_v55  ;;  %v4038_v55 = vld [vmem:[#allocation10 + $0x3ac] sm:$0xf]  ;;  %v3592_v1 = vor.u32 %v4030_v63, %v3589_v0  ;;  %v3573_v4 = vld [vmem:[#allocation10 + $0x358] sm:$0xf0]  ;;  %2534 = vmatpush.bf16.msrb.mxu0 %v4056_v14 }
 0x18a   :  { %2231 = vmatpush.bf16.msra.mxu1 %v3336_v57  ;;  %2196 = vmatmul.bf16.vlgmr.msrb.gmra.mxu2 %v4424_v37  ;;  %v3621_v57 = vld [vmem:[#allocation10 + $0x3b8] sm:$0xf0]  ;;  %v4066_v52 = vld [vmem:[#allocation13 + $0x88] sm:$0xff] }
 0x18b   :  { %2240 = vmatpush.bf16.msra.mxu2 %v3528_v58  ;;  %v3624_v58 = vor.u32 %v4038_v55, %v3621_v57 }
 0x18d   :  { %2202 = vmatpush.bf16.msrb.mxu3 %v3636_v5  ;;  %v3576_v5 = vor.u32 %v4026_v3, %v3573_v4  ;;  %v4078_v4 = vld [vmem:[#allocation13 + $0xe8] sm:$0xff] }
 0x18e   :  { %2232 = vmatpush.bf16.msra.mxu1 %v3320_v6  ;;  %v4022_v6 = vld [vmem:[#allocation10 + $0x32c] sm:$0xf] }
 0x18f   :  { %2241 = vmatpush.bf16.msra.mxu2 %v3512_v7  ;;  %v3557_v7 = vld [vmem:[#allocation10 + $0x338] sm:$0xf0] }
 0x190   :  { %v3560_v8 = vor.u32 %v4022_v6, %v3557_v7 }
 0x191   :  { %2203 = vmatpush.bf16.msrb.mxu3 %v3620_v15  ;;  %v4055_v15 = vld [vmem:[#allocation13 + $0x30] sm:$0xff] }
 0x192   :  { %2233 = vmatpush.bf16.msra.mxu1 %v3304_v61  ;;  %2535 = vmatpush.bf16.msrb.mxu0 %v4055_v15 }
 0x193   :  { %2242 = vmatpush.bf16.msra.mxu2 %v3496_v16 }
 0x195   :  { %2204 = vmatpush.bf16.msrb.mxu3 %v3604_v23  ;;  %v4063_v23 = vld [vmem:[#allocation13 + $0x70] sm:$0xff] }
 0x196   :  { %2234 = vmatpush.bf16.msra.mxu1 %v3288_v24  ;;  %2536 = vmatpush.bf16.msrb.mxu0 %v4054_v18  ;;  %v4075_v18 = vld [vmem:[#allocation13 + $0xd0] sm:$0xff] }
 0x197   :  { %2243 = vmatpush.bf16.msra.mxu2 %v3480_v25 }
 0x198   :  { %2157 = vmatmul.bf16.vlgmr.msra.gmra.mxu3 %v4432_v56 }
 0x199   :  { %2205 = vmatpush.bf16.msrb.mxu3 %v3588_v30  ;;  %2235 = vmatmul.bf16.vlgmr.msra.gmra.mxu1 %v4419_v11  ;;  %v3416_v11 = vor.u32 %v3986_v45, %v3413_v17  ;;  %v4068_v17 = vld [vmem:[#allocation13 + $0x98] sm:$0xff] }
 0x19a   :  { %2537 = vmatpush.bf16.msrb.mxu0 %v4053_v19  ;;  %2547 = vmatpush.bf16.msrb.mxu1 %v4064_v22 }
 0x19b   :  { %2244 = vmatpush.bf16.msra.mxu2 %v3464_v31 }
 0x19d   :  { %2206 = vmatpush.bf16.msrb.mxu3 %v3572_v34  ;;  %v4071_v34 = vld [vmem:[#allocation13 + $0xb0] sm:$0xff] }
 0x19e   :  { %2538 = vmatpush.bf16.msrb.mxu0 %v4052_v21  ;;  %2548 = vmatpush.bf16.msrb.mxu1 %v4063_v23 }
 0x19f   :  { %2245 = vmatpush.bf16.msra.mxu2 %v3448_v35 }
 0x1a1   :  { %2207 = vmatpush.bf16.msrb.mxu3 %v3556_v41  ;;  %v4069_v41 = vld [vmem:[#allocation13 + $0xa0] sm:$0xff] }
 0x1a2   :  { %2549 = vmatpush.bf16.msrb.mxu1 %v4062_v27 }
 0x1a3   :  { %2246 = vmatpush.bf16.msra.mxu2 %v3432_v42  ;;  %v4450_v42 = vld [vmem:[#allocation12] sm:$0xf] }
 0x1a4   :  { %v1410_v45 = vperm.slane %v4450_v42, 0  ;;  %v1411_v0 = vperm.slane %v4450_v42, 1  ;;  %v1412_v19 = vperm.slane %v4450_v42, 2 }
 0x1a5   :  { %2208 = vmatpush.bf16.msrb.mxu3 %v3540_v49 }
 0x1a6   :  { %2550 = vmatpush.bf16.msrb.mxu1 %v4061_v29 }
 0x1a7   :  { %2247 = vmatpush.bf16.msra.mxu2 %v3416_v11 }
 0x1a8   :  { %2209 = vmatmul.bf16.vlgmr.msrb.gmra.mxu3 %v4432_v56 }
 0x1a9   :  { %2253 = vmatpush.bf16.msra.mxu3 %v3656_v50 }
 0x1aa   :  { %2248 = vmatmul.bf16.vlgmr.msra.gmra.mxu2 %v4424_v37  ;;  %v3541_v37 = vld [vmem:[#allocation10 + $0x318] sm:$0xf0]  ;;  %2551 = vmatpush.bf16.msrb.mxu1 %v4060_v48 }
 0x1ab   :  { %v3544_v10 = vor.u32 %v4018_v9, %v3541_v37  ;;  %2560 = vmatpush.bf16.msrb.mxu2 %v4072_v33  ;;  %v4077_v9 = vld [vmem:[#allocation13 + $0xe0] sm:$0xff] }
 0x1ad   :  { %2254 = vmatpush.bf16.msra.mxu3 %v3640_v54 }
 0x1ae   :  { %2552 = vmatpush.bf16.msrb.mxu1 %v4059_v53 }
 0x1af   :  { %2561 = vmatpush.bf16.msrb.mxu2 %v4071_v34 }
 0x1b1   :  { %2255 = vmatpush.bf16.msra.mxu3 %v3624_v58 }
 0x1b2   :  { %2553 = vmatpush.bf16.msrb.mxu1 %v4058_v38 }
 0x1b3   :  { %2562 = vmatpush.bf16.msrb.mxu2 %v4070_v39 }
 0x1b5   :  { %2256 = vmatpush.bf16.msra.mxu3 %v3608_v62 }
 0x1b6   :  { %2554 = vmatpush.bf16.msrb.mxu1 %v4057_v40 }
 0x1b7   :  { %2563 = vmatpush.bf16.msrb.mxu2 %v4069_v41 }
 0x1b9   :  { %2257 = vmatpush.bf16.msra.mxu3 %v3592_v1  ;;  %v4079_v1 = vld [vmem:[#allocation13 + $0xf0] sm:$0xff] }
 0x1bb   :  { %2564 = vmatpush.bf16.msrb.mxu2 %v4068_v17 }
 0x1bd   :  { %2258 = vmatpush.bf16.msra.mxu3 %v3576_v5 }
 0x1bf   :  { %2565 = vmatpush.bf16.msrb.mxu2 %v4067_v46 }
 0x1c1   :  { %2259 = vmatpush.bf16.msra.mxu3 %v3560_v8 }
 0x1c3   :  { %2566 = vmatpush.bf16.msrb.mxu2 %v4066_v52 }
 0x1c5   :  { %2260 = vmatpush.bf16.msra.mxu3 %v3544_v10  ;;  %v2067_v12 = vpop.f32.mrf.mxu0 }
 0x1c6   :  { %v2068_v49 = vadd.f32 %v2067_v12, %v1410_v45  ;;  %v4094_v45 = vld [vmem:[%s4474_s8] ss:$0 sm:$0xff] }
 0x1c7   :  { %2567 = vmatpush.bf16.msrb.mxu2 %v4065_v59 }
 0x1c8   :  { %2261 = vmatmul.bf16.vlgmr.msra.gmra.mxu3 %v4432_v56  ;;  %v4051_v56 = vld [vmem:[#allocation13 + $0x10] sm:$0xff] }
 0x1c9   :  { %2539 = vmatpush.bf16.msrb.mxu0 %v4051_v56  ;;  %2573 = vmatpush.bf16.msrb.mxu3 %v4080_v60  ;;  %v4073_v56 = vld [vmem:[#allocation13 + $0xc0] sm:$0xff] }
 0x1cd   :  { %v2069_v13 = vpop.f32.mrf.mxu0  ;;  %2540 = vmatpush.bf16.msrb.mxu0 %v4050_v26  ;;  %2574 = vmatpush.bf16.msrb.mxu3 %v4079_v1 }
 0x1ce   :  { %v4076_v13 = vld [vmem:[#allocation13 + $0xd8] sm:$0xff] }
 0x1d1   :  { %2541 = vmatpush.bf16.msrb.mxu0 %v4049_v28  ;;  %2575 = vmatpush.bf16.msrb.mxu3 %v4078_v4 }
 0x1d5   :  { %v2080_v61 = vpop.f32.mrf.mxu1  ;;  %v4442_v16 = vpop.f32.mrf.mxu0  ;;  %2576 = vmatpush.bf16.msrb.mxu3 %v4077_v9 }
 0x1d6   :  { %v2081_v50 = vadd.f32 %v2080_v61, %v2068_v49  ;;  %v2120_v5 = vadd.f32 %v4442_v16, %v1411_v0 }
 0x1d9   :  { %2577 = vmatpush.bf16.msrb.mxu3 %v4076_v13 }
 0x1dd   :  { %v2082_v20 = vpop.f32.mrf.mxu1  ;;  %v2121_v2 = vpop.f32.mrf.mxu0  ;;  %2578 = vmatpush.bf16.msrb.mxu3 %v4075_v18 }
 0x1de   :  { %v4074_v2 = vld [vmem:[#allocation13 + $0xc8] sm:$0xff] }
 0x1e1   :  { %2579 = vmatpush.bf16.msrb.mxu3 %v4074_v2 }
 0x1e5   :  { %v4444_v24 = vpop.f32.mrf.mxu1  ;;  %v4446_v25 = vpop.f32.mrf.mxu0  ;;  %2580 = vmatpush.bf16.msrb.mxu3 %v4073_v56 }
 0x1e6   :  { %v2133_v8 = vadd.f32 %v4444_v24, %v2120_v5  ;;  %v2172_v20 = vadd.f32 %v4446_v25, %v1412_v19 }
 0x1ec   :  { %v2093_v30 = vpop.f32.mrf.mxu2 }
 0x1ed   :  { %v2134_v31 = vpop.f32.mrf.mxu1  ;;  %v2173_v32 = vpop.f32.mrf.mxu0  ;;  %v2094_v51 = vadd.f32 %v2093_v30, %v2081_v50 }
 0x1ee   :  { %v1413_v31 = vperm.slane %v4450_v42, 3 }
 0x1f4   :  { %v2095_v35 = vpop.f32.mrf.mxu2 }
 0x1f6   :  { %v4448_v36 = vpop.f32.mrf.mxu1 }
 0x1f7   :  { %v2185_v21 = vadd.f32 %v4448_v36, %v2172_v20 }
 0x1fd   :  { %v2145_v43 = vpop.f32.mrf.mxu2 }
 0x1fe   :  { %v2186_v44 = vpop.f32.mrf.mxu1  ;;  %v2146_v37 = vadd.f32 %v2145_v43, %v2133_v8 }
 0x205   :  { %v2223_v47 = vpop.f32.mrf.mxu0  ;;  %v2147_v11 = vpop.f32.mrf.mxu2 }
 0x206   :  { %v2224_v32 = vadd.f32 %v2223_v47, %v1413_v31 }
 0x20b   :  { %v2106_v54 = vpop.f32.mrf.mxu3 }
 0x20c   :  { %v2107_v55 = vadd.f32 %v2106_v54, %v2094_v51 }
 0x20d   :  { %v2225_v57 = vpop.f32.mrf.mxu0  ;;  %v2197_v62 = vpop.f32.mrf.mxu2 }
 0x20e   :  { %v2266_v58 = vmax.f32 %v2107_v55, 0.0  ;;  %v2198_v22 = vadd.f32 %v2197_v62, %v2185_v21 }
 0x210   :  { %v2270_v63 = vpack.c.bf16 %v2266_v58, %v2266_v58 }
 0x212   :  { %2542 = vmatmul.bf16.vlgmr.msrb.gmra.mxu0 %v2270_v63 }
 0x213   :  { %v2108_v3 = vpop.f32.mrf.mxu3 }
 0x215   :  { %v2199_v7 = vpop.f32.mrf.mxu2 }
 0x216   :  { %v2236_v6 = vpop.f32.mrf.mxu1 }
 0x217   :  { %v2237_v48 = vadd.f32 %v2236_v6, %v2224_v32 }
 0x21b   :  { %v2158_v10 = vpop.f32.mrf.mxu3 }
 0x21c   :  { %v2159_v12 = vadd.f32 %v2158_v10, %v2146_v37 }
 0x21e   :  { %v2267_v14 = vmax.f32 %v2159_v12, 0.0  ;;  %v2238_v15 = vpop.f32.mrf.mxu1 }
 0x220   :  { %v2271_v61 = vpack.c.bf16 %v2267_v14, %v2267_v14 }
 0x222   :  { %2555 = vmatmul.bf16.vlgmr.msrb.gmra.mxu1 %v2271_v61 }
 0x223   :  { %v2160_v16 = vpop.f32.mrf.mxu3 }
 0x22b   :  { %v2210_v23 = vpop.f32.mrf.mxu3 }
 0x22c   :  { %v2211_v24 = vadd.f32 %v2210_v23, %v2198_v22 }
 0x22d   :  { %v2249_v26 = vpop.f32.mrf.mxu2 }
 0x22e   :  { %v2268_v27 = vmax.f32 %v2211_v24, 0.0  ;;  %v2250_v25 = vadd.f32 %v2249_v26, %v2237_v48 }
 0x230   :  { %v2272_v28 = vpack.c.bf16 %v2268_v27, %v2268_v27 }
 0x232   :  { %2568 = vmatmul.bf16.vlgmr.msrb.gmra.mxu2 %v2272_v28 }
 0x233   :  { %v2212_v29 = vpop.f32.mrf.mxu3 }
 0x235   :  { %v2251_v30 = vpop.f32.mrf.mxu2 }
 0x24b   :  { %v2262_v33 = vpop.f32.mrf.mxu3 }
 0x24c   :  { %v2263_v53 = vadd.f32 %v2262_v33, %v2250_v25 }
 0x24e   :  { %v2269_v34 = vmax.f32 %v2263_v53, 0.0 }
 0x250   :  { %v2273_v35 = vpack.c.bf16 %v2269_v34, %v2269_v34 }
 0x252   :  { %2581 = vmatmul.bf16.vlgmr.msrb.gmra.mxu3 %v2273_v35 }
 0x253   :  { %v2264_v36 = vpop.f32.mrf.mxu3 }
 0x28f   :  { %v2543_v38 = vpop.f32.mrf.mxu0 }
 0x290   :  { %v2544_v42 = vadd.f32 %v4094_v45, %v2543_v38 }
 0x297   :  { %v2545_v39 = vpop.f32.mrf.mxu0 }
 0x29f   :  { %v2556_v40 = vpop.f32.mrf.mxu1 }
 0x2a0   :  { %v2557_v17 = vadd.f32 %v2556_v40, %v2544_v42 }
 0x2a7   :  { %v2558_v41 = vpop.f32.mrf.mxu1 }
 0x2b5   :  { %v2569_v43 = vpop.f32.mrf.mxu2 }
 0x2b6   :  { %v2570_v46 = vadd.f32 %v2569_v43, %v2557_v17 }
 0x2bd   :  { %v2571_v44 = vpop.f32.mrf.mxu2 }
 0x2d5   :  { %v2582_v47 = vpop.f32.mrf.mxu3 }
 0x2d6   :  { %v2583_v49 = vadd.f32 %v2582_v47, %v2570_v46 }
 0x2d8   :  { %v2586_v11 = vmax.f32 %v2583_v49, 0.0 }
 0x2da   :  { %2587 = vst [vmem:[%s4475_s9] sm:$0xff] %v2586_v11 }
 0x2dd   :  { %v2584_v50 = vpop.f32.mrf.mxu3 }
 0x2de   :  { %2592 = vsyncpa [#allocation3], 1 }
 0x2df   :  { %2593 = vsyncpa [#allocation5], 1 }
 0x2e0   :  { %2594 = vsyncpa [#allocation8], 1 }
 0x2e1   :  { %2595 = vsyncpa [#allocation11], 1 }
 0x2e2   :  { %2596 = vsyncpa [#allocation14], 1 }

</bundles_post_ra>
